<compile_context>
chip_gen: v7x
topology: tpu7x:2x2x1
jax: 0.10.0
libtpu: 0.0.40
codegen_flags: <defaults>
</compile_context>

<pallas_src>
import functools

import jax
import jax.numpy as jnp
import numpy as np
from jax.experimental import pallas as pl
from jax.experimental.pallas import tpu as pltpu


# ----------------------------- in-kernel math ------------------------------ #

_SQRT_2_OVER_PI = 0.7978845608028654


def _gelu(x):
  # tanh-form GELU: the transcendental goes to the EUP slot (VALU has slack).
  return 0.5 * x * (1.0 + jnp.tanh(_SQRT_2_OVER_PI * (x + 0.044715 * x * x * x)))


def _bdot(a_f32, w_bf16):
  # bf16 MXU matmul with f32 accumulation.
  return jnp.dot(a_f32.astype(jnp.bfloat16), w_bf16,
                 preferred_element_type=jnp.float32)


# --------------------------------- kernel ---------------------------------- #

def _lifting_kernel(bc_ref,
                    ws_ref, bs_ref,
                    wc1_ref, bc1_ref,
                    wc2_ref, bc2_ref,
                    wf1s_ref, wf1c_ref, bf1_ref,
                    wf2_ref, bf2_ref,
                    wf3_ref, bf3_ref,
                    wo_ref, bo_ref,
                    out_ref,
                    *, bc_state_dim, num_controls):
  x = bc_ref[...]                                       # (BB, S + C) f32

  # State branches: K = bc_state_dim is tiny -> VPU broadcast-MACs (no MXU).
  # ws_ref holds the block-diagonal rows, so the sum IS the branch concat.
  sf = bs_ref[...]                                      # (1, S*H)
  for i in range(bc_state_dim):
    sf = sf + x[:, i:i + 1] * ws_ref[i:i + 1, :]
  state_feat = _gelu(sf)                                # (BB, S*H)

  # Control MLP layer 1: K = num_controls tiny -> VPU broadcast-MACs.
  cf = bc1_ref[...]                                     # (1, Hc1)
  for j in range(num_controls):
    col = bc_state_dim + j
    cf = cf + x[:, col:col + 1] * wc1_ref[j:j + 1, :]
  c = _gelu(cf)                                         # (BB, Hc1)

  # Control MLP layer 2 (small weight, keep f32).  Dropout = identity (eval).
  c = _gelu(jnp.dot(c, wc2_ref[...], preferred_element_type=jnp.float32)
            + bc2_ref[...])                             # (BB, Hc2)

  # Fusion MLP.  Concat eliminated: w_f1 split into state/control halves that
  # feed the same f32 accumulator.  Big weights are bf16 on the MXU.
  f = _gelu(_bdot(state_feat, wf1s_ref[...]) + _bdot(c, wf1c_ref[...])
            + bf1_ref[...])
  f = _gelu(_bdot(f, wf2_ref[...]) + bf2_ref[...])
  f = _gelu(_bdot(f, wf3_ref[...]) + bf3_ref[...])
  # Lane-dense (padded-to-128) output store.
  out_ref[...] = _bdot(f, wo_ref[...]) + bo_ref[...]


# -------------------------------- wrapper ----------------------------------- #

def universal_lifting_forward(bc_ctrl_full, params, *, bc_state_dim,
                              num_controls, num_state_vars, nx, block_b=256):
  """Pallas forward.  bc_ctrl_full: (B, bc_state_dim + num_controls) float32."""
  assert bc_state_dim > 0 and num_controls > 0
  B, in_dim = bc_ctrl_full.shape
  assert in_dim == bc_state_dim + num_controls
  out_dim = num_state_vars * nx
  out_pad = ((out_dim + 127) // 128) * 128              # lane-dense stores

  state_feat_dim = params["w_state"].shape[1]           # bc_state_dim * H

  # Kernel-side parameter prep: split w_f1, cast big weights to bf16, pad out.
  bf16 = jnp.bfloat16
  wf1_s = params["w_f1"][:state_feat_dim].astype(bf16)
  wf1_c = params["w_f1"][state_feat_dim:].astype(bf16)
  wf2 = params["w_f2"].astype(bf16)
  wf3 = params["w_f3"].astype(bf16)
  pad_n = out_pad - out_dim
  wo = jnp.pad(params["w_out"], ((0, 0), (0, pad_n))).astype(bf16)
  bo = jnp.pad(params["b_out"], ((0, 0), (0, pad_n)))

  # Batch tiling: single block for small B, otherwise a 1-D "parallel" grid
  # (megacore on v7x) with weights resident via constant index maps.
  # (On v5e a smaller block_b, e.g. 128, matches the narrower 4x128^2 MXU.)
  if B > block_b:
    bb = block_b
    b_pad = pl.cdiv(B, bb) * bb
    x = bc_ctrl_full if b_pad == B else jnp.pad(
        bc_ctrl_full, ((0, b_pad - B), (0, 0)))
  else:
    bb, b_pad, x = B, B, bc_ctrl_full
  grid = (b_pad // bb,)

  weights = (params["w_state"], params["b_state"],
             params["w_c1"], params["b_c1"],
             params["w_c2"], params["b_c2"],
             wf1_s, wf1_c, params["b_f1"],
             wf2, params["b_f2"],
             wf3, params["b_f3"],
             wo, bo)

  in_specs = [pl.BlockSpec((bb, in_dim), lambda i: (i, 0))]
  in_specs += [pl.BlockSpec(w.shape, lambda i: (0, 0)) for w in weights]

  kernel = functools.partial(_lifting_kernel,
                             bc_state_dim=bc_state_dim,
                             num_controls=num_controls)

  out = pl.pallas_call(
      kernel,
      out_shape=jax.ShapeDtypeStruct((b_pad, out_pad), jnp.float32),
      grid=grid,
      in_specs=in_specs,
      out_specs=pl.BlockSpec((bb, out_pad), lambda i: (i, 0)),
      compiler_params=pltpu.CompilerParams(
          dimension_semantics=("parallel",)),
  )(x, *weights)

  return out[:B, :out_dim].reshape(B, num_state_vars, nx)


# --------------------------- deterministic params --------------------------- #

def init_params(key, *, bc_state_dim, num_controls, num_state_vars, nx,
                h_state=64, h_ctrl=(64, 128), h_fusion=(256, 512, 256)):
  n_linears = bc_state_dim + len(h_ctrl) + len(h_fusion) + 1
  keys = iter(jax.random.split(key, 2 * n_linears))

  def linear(fan_in, fan_out):
    # torch.nn.Linear default init: U(-1/sqrt(fan_in), 1/sqrt(fan_in)).
    bound = 1.0 / np.sqrt(fan_in)
    w = jax.random.uniform(next(keys), (fan_in, fan_out), jnp.float32,
                           -bound, bound)
    b = jax.random.uniform(next(keys), (1, fan_out), jnp.float32,
                           -bound, bound)
    return w, b

  params = {}

  # State branches -> single block-diagonal weight (zeros are tiny: S x S*H).
  ws = jnp.zeros((bc_state_dim, bc_state_dim * h_state), jnp.float32)
  bs = []
  for i in range(bc_state_dim):
    w_i, b_i = linear(1, h_state)
    ws = ws.at[i, i * h_state:(i + 1) * h_state].set(w_i[0])
    bs.append(b_i)
  params["w_state"] = ws
  params["b_state"] = jnp.concatenate(bs, axis=-1)

  params["w_c1"], params["b_c1"] = linear(num_controls, h_ctrl[0])
  params["w_c2"], params["b_c2"] = linear(h_ctrl[0], h_ctrl[1])

  fusion_in = bc_state_dim * h_state + h_ctrl[-1]
  params["w_f1"], params["b_f1"] = linear(fusion_in, h_fusion[0])
  params["w_f2"], params["b_f2"] = linear(h_fusion[0], h_fusion[1])
  params["w_f3"], params["b_f3"] = linear(h_fusion[1], h_fusion[2])
  params["w_out"], params["b_out"] = linear(h_fusion[2], num_state_vars * nx)
  return params


# ------------------------------ references ---------------------------------- #

def reference_forward(bc_ctrl_full, params, *, bc_state_dim, num_state_vars, nx):
  """Module semantics: f32 weights, exact (erf) GELU, eval-mode dropout."""
  gelu = lambda x: jax.nn.gelu(x, approximate=False)
  s = gelu(bc_ctrl_full[:, :bc_state_dim] @ params["w_state"]
           + params["b_state"])
  c = bc_ctrl_full[:, bc_state_dim:]
  c = gelu(c @ params["w_c1"] + params["b_c1"])
  c = gelu(c @ params["w_c2"] + params["b_c2"])
  f = jnp.concatenate([s, c], axis=-1)
  f = gelu(f @ params["w_f1"] + params["b_f1"])
  f = gelu(f @ params["w_f2"] + params["b_f2"])
  f = gelu(f @ params["w_f3"] + params["b_f3"])
  out = f @ params["w_out"] + params["b_out"]
  return out.reshape(-1, num_state_vars, nx)


def matched_reference_forward(bc_ctrl_full, params, *, bc_state_dim,
                              num_state_vars, nx):
  """Pure-JAX model of the kernel numerics (bf16 big weights, tanh GELU)."""
  S = bc_state_dim
  sfd = params["w_state"].shape[1]
  b16 = lambda w: w.astype(jnp.bfloat16)
  s = _gelu(bc_ctrl_full[:, :S] @ params["w_state"] + params["b_state"])
  c = bc_ctrl_full[:, S:]
  c = _gelu(c @ params["w_c1"] + params["b_c1"])
  c = _gelu(c @ params["w_c2"] + params["b_c2"])
  f = _gelu(_bdot(s, b16(params["w_f1"][:sfd]))
            + _bdot(c, b16(params["w_f1"][sfd:])) + params["b_f1"])
  f = _gelu(_bdot(f, b16(params["w_f2"])) + params["b_f2"])
  f = _gelu(_bdot(f, b16(params["w_f3"])) + params["b_f3"])
  out = _bdot(f, b16(params["w_out"])) + params["b_out"]
  return out.reshape(-1, num_state_vars, nx)


# ---------------------------------- main ------------------------------------ #

if __name__ == "__main__":
  bc_state_dim = 2
  num_controls = 3
  num_state_vars = 2
  nx = 32                       # output_dim_per_var == nx

  key = jax.random.PRNGKey(0)
  k_params, k_small, k_big = jax.random.split(key, 3)

  params = init_params(k_params,
                       bc_state_dim=bc_state_dim,
                       num_controls=num_controls,
                       num_state_vars=num_state_vars,
                       nx=nx)

  # Two cases: tiny batch (single block) and a ragged batch exercising the
  # 1-D "parallel" grid + padding path.
  for name, batch, block_b, k in (("small", 4, 256, k_small),
                                  ("tiled", 300, 128, k_big)):
    bc_ctrl = jax.random.normal(
        k, (batch, bc_state_dim + num_controls), jnp.float32)

    out = jax.block_until_ready(
        universal_lifting_forward(bc_ctrl, params,
                                  bc_state_dim=bc_state_dim,
                                  num_controls=num_controls,
                                  num_state_vars=num_state_vars,
                                  nx=nx, block_b=block_b))
    assert out.shape == (batch, num_state_vars, nx), (name, out.shape)

    ref_match = jax.block_until_ready(
        matched_reference_forward(bc_ctrl, params,
                                  bc_state_dim=bc_state_dim,
                                  num_state_vars=num_state_vars, nx=nx))
    ref_exact = jax.block_until_ready(
        reference_forward(bc_ctrl, params,
                          bc_state_dim=bc_state_dim,
                          num_state_vars=num_state_vars, nx=nx))

    # Tight check against a reference modelling the kernel's numerics.
    np.testing.assert_allclose(np.asarray(out), np.asarray(ref_match),
                               rtol=3e-3, atol=3e-3,
                               err_msg=f"matched-ref mismatch ({name})")
    # Looser check against the f32/erf module semantics (bf16 + tanh drift).
    np.testing.assert_allclose(np.asarray(out), np.asarray(ref_exact),
                               rtol=3e-2, atol=3e-2,
                               err_msg=f"f32-ref mismatch ({name})")

  print("KERNEL_OK")
</pallas_src>

<mosaic_0001>
module attributes {stable_mosaic.version = 11 : i64} {
  func.func @_lifting_kernel(%arg0: i32, %arg1: memref<4x5xf32, #tpu.memory_space<vmem>>, %arg2: memref<2x128xf32, #tpu.memory_space<vmem>>, %arg3: memref<1x128xf32, #tpu.memory_space<vmem>>, %arg4: memref<3x64xf32, #tpu.memory_space<vmem>>, %arg5: memref<1x64xf32, #tpu.memory_space<vmem>>, %arg6: memref<64x128xf32, #tpu.memory_space<vmem>>, %arg7: memref<1x128xf32, #tpu.memory_space<vmem>>, %arg8: memref<128x256xbf16, #tpu.memory_space<vmem>>, %arg9: memref<128x256xbf16, #tpu.memory_space<vmem>>, %arg10: memref<1x256xf32, #tpu.memory_space<vmem>>, %arg11: memref<256x512xbf16, #tpu.memory_space<vmem>>, %arg12: memref<1x512xf32, #tpu.memory_space<vmem>>, %arg13: memref<512x256xbf16, #tpu.memory_space<vmem>>, %arg14: memref<1x256xf32, #tpu.memory_space<vmem>>, %arg15: memref<256x128xbf16, #tpu.memory_space<vmem>>, %arg16: memref<1x128xf32, #tpu.memory_space<vmem>>, %arg17: memref<4x128xf32, #tpu.memory_space<vmem>>) attributes {dimension_semantics = [#tpu.dimension_semantics<parallel>], iteration_bounds = array<i64: 1>, scalar_prefetch = 0 : i64, scratch_operands = 0 : i64, tpu.core_type = #tpu.core_type<tc>, window_params = [{transform_indices = @transform_0, window_bounds = array<i64: 4, 5>}, {pipeline_mode = #tpu.pipeline_mode<synchronous>, transform_indices = @transform_1, window_bounds = array<i64: 2, 128>}, {pipeline_mode = #tpu.pipeline_mode<synchronous>, transform_indices = @transform_2, window_bounds = array<i64: 1, 128>}, {pipeline_mode = #tpu.pipeline_mode<synchronous>, transform_indices = @transform_3, window_bounds = array<i64: 3, 64>}, {pipeline_mode = #tpu.pipeline_mode<synchronous>, transform_indices = @transform_4, window_bounds = array<i64: 1, 64>}, {pipeline_mode = #tpu.pipeline_mode<synchronous>, transform_indices = @transform_5, window_bounds = array<i64: 64, 128>}, {pipeline_mode = #tpu.pipeline_mode<synchronous>, transform_indices = @transform_6, window_bounds = array<i64: 1, 128>}, {pipeline_mode = #tpu.pipeline_mode<synchronous>, transform_indices = @transform_7, window_bounds = array<i64: 128, 256>}, {pipeline_mode = #tpu.pipeline_mode<synchronous>, transform_indices = @transform_8, window_bounds = array<i64: 128, 256>}, {pipeline_mode = #tpu.pipeline_mode<synchronous>, transform_indices = @transform_9, window_bounds = array<i64: 1, 256>}, {pipeline_mode = #tpu.pipeline_mode<synchronous>, transform_indices = @transform_10, window_bounds = array<i64: 256, 512>}, {pipeline_mode = #tpu.pipeline_mode<synchronous>, transform_indices = @transform_11, window_bounds = array<i64: 1, 512>}, {pipeline_mode = #tpu.pipeline_mode<synchronous>, transform_indices = @transform_12, window_bounds = array<i64: 512, 256>}, {pipeline_mode = #tpu.pipeline_mode<synchronous>, transform_indices = @transform_13, window_bounds = array<i64: 1, 256>}, {pipeline_mode = #tpu.pipeline_mode<synchronous>, transform_indices = @transform_14, window_bounds = array<i64: 256, 128>}, {pipeline_mode = #tpu.pipeline_mode<synchronous>, transform_indices = @transform_15, window_bounds = array<i64: 1, 128>}, {transform_indices = @transform_16, window_bounds = array<i64: 4, 128>}]} {
    %c0 = arith.constant 0 : index
    %c0_0 = arith.constant 0 : index
    %0 = vector.load %arg1[%c0, %c0_0] : memref<4x5xf32, #tpu.memory_space<vmem>>, vector<4x5xf32>
    %c0_1 = arith.constant 0 : index
    %c0_2 = arith.constant 0 : index
    %1 = vector.load %arg3[%c0_1, %c0_2] : memref<1x128xf32, #tpu.memory_space<vmem>>, vector<1x128xf32>
    %2 = vector.extract_strided_slice %0 {offsets = [0, 0], sizes = [4, 1], strides = [1, 1]} : vector<4x5xf32> to vector<4x1xf32>
    %c0_3 = arith.constant 0 : index
    %c0_4 = arith.constant 0 : index
    %3 = vector.load %arg2[%c0_3, %c0_4] : memref<2x128xf32, #tpu.memory_space<vmem>>, vector<1x128xf32>
    %4 = vector.broadcast %2 : vector<4x1xf32> to vector<4x128xf32>
    %5 = vector.broadcast %3 : vector<1x128xf32> to vector<4x128xf32>
    %6 = arith.mulf %4, %5 : vector<4x128xf32>
    %7 = vector.broadcast %1 : vector<1x128xf32> to vector<4x128xf32>
    %8 = arith.addf %7, %6 : vector<4x128xf32>
    %9 = vector.extract_strided_slice %0 {offsets = [0, 1], sizes = [4, 1], strides = [1, 1]} : vector<4x5xf32> to vector<4x1xf32>
    %c1 = arith.constant 1 : index
    %c0_5 = arith.constant 0 : index
    %10 = vector.load %arg2[%c1, %c0_5] : memref<2x128xf32, #tpu.memory_space<vmem>>, vector<1x128xf32>
    %11 = vector.broadcast %9 : vector<4x1xf32> to vector<4x128xf32>
    %12 = vector.broadcast %10 : vector<1x128xf32> to vector<4x128xf32>
    %13 = arith.mulf %11, %12 : vector<4x128xf32>
    %14 = arith.addf %8, %13 : vector<4x128xf32>
    %cst = arith.constant 5.000000e-01 : f32
    %15 = vector.broadcast %cst : f32 to vector<4x128xf32>
    %16 = arith.mulf %15, %14 : vector<4x128xf32>
    %cst_6 = arith.constant 4.471500e-02 : f32
    %17 = vector.broadcast %cst_6 : f32 to vector<4x128xf32>
    %18 = arith.mulf %17, %14 : vector<4x128xf32>
    %19 = arith.mulf %18, %14 : vector<4x128xf32>
    %20 = arith.mulf %19, %14 : vector<4x128xf32>
    %21 = arith.addf %14, %20 : vector<4x128xf32>
    %cst_7 = arith.constant 0.797884583 : f32
    %22 = vector.broadcast %cst_7 : f32 to vector<4x128xf32>
    %23 = arith.mulf %22, %21 : vector<4x128xf32>
    %24 = math.tanh %23 : vector<4x128xf32>
    %cst_8 = arith.constant 1.000000e+00 : f32
    %25 = vector.broadcast %cst_8 : f32 to vector<4x128xf32>
    %26 = arith.addf %25, %24 : vector<4x128xf32>
    %27 = arith.mulf %16, %26 : vector<4x128xf32>
    %c0_9 = arith.constant 0 : index
    %c0_10 = arith.constant 0 : index
    %28 = vector.load %arg5[%c0_9, %c0_10] : memref<1x64xf32, #tpu.memory_space<vmem>>, vector<1x64xf32>
    %29 = vector.extract_strided_slice %0 {offsets = [0, 2], sizes = [4, 1], strides = [1, 1]} : vector<4x5xf32> to vector<4x1xf32>
    %c0_11 = arith.constant 0 : index
    %c0_12 = arith.constant 0 : index
    %30 = vector.load %arg4[%c0_11, %c0_12] : memref<3x64xf32, #tpu.memory_space<vmem>>, vector<1x64xf32>
    %31 = vector.broadcast %29 : vector<4x1xf32> to vector<4x64xf32>
    %32 = vector.broadcast %30 : vector<1x64xf32> to vector<4x64xf32>
    %33 = arith.mulf %31, %32 : vector<4x64xf32>
    %34 = vector.broadcast %28 : vector<1x64xf32> to vector<4x64xf32>
    %35 = arith.addf %34, %33 : vector<4x64xf32>
    %36 = vector.extract_strided_slice %0 {offsets = [0, 3], sizes = [4, 1], strides = [1, 1]} : vector<4x5xf32> to vector<4x1xf32>
    %c1_13 = arith.constant 1 : index
    %c0_14 = arith.constant 0 : index
    %37 = vector.load %arg4[%c1_13, %c0_14] : memref<3x64xf32, #tpu.memory_space<vmem>>, vector<1x64xf32>
    %38 = vector.broadcast %36 : vector<4x1xf32> to vector<4x64xf32>
    %39 = vector.broadcast %37 : vector<1x64xf32> to vector<4x64xf32>
    %40 = arith.mulf %38, %39 : vector<4x64xf32>
    %41 = arith.addf %35, %40 : vector<4x64xf32>
    %42 = vector.extract_strided_slice %0 {offsets = [0, 4], sizes = [4, 1], strides = [1, 1]} : vector<4x5xf32> to vector<4x1xf32>
    %c2 = arith.constant 2 : index
    %c0_15 = arith.constant 0 : index
    %43 = vector.load %arg4[%c2, %c0_15] : memref<3x64xf32, #tpu.memory_space<vmem>>, vector<1x64xf32>
    %44 = vector.broadcast %42 : vector<4x1xf32> to vector<4x64xf32>
    %45 = vector.broadcast %43 : vector<1x64xf32> to vector<4x64xf32>
    %46 = arith.mulf %44, %45 : vector<4x64xf32>
    %47 = arith.addf %41, %46 : vector<4x64xf32>
    %cst_16 = arith.constant 5.000000e-01 : f32
    %48 = vector.broadcast %cst_16 : f32 to vector<4x64xf32>
    %49 = arith.mulf %48, %47 : vector<4x64xf32>
    %cst_17 = arith.constant 4.471500e-02 : f32
    %50 = vector.broadcast %cst_17 : f32 to vector<4x64xf32>
    %51 = arith.mulf %50, %47 : vector<4x64xf32>
    %52 = arith.mulf %51, %47 : vector<4x64xf32>
    %53 = arith.mulf %52, %47 : vector<4x64xf32>
    %54 = arith.addf %47, %53 : vector<4x64xf32>
    %cst_18 = arith.constant 0.797884583 : f32
    %55 = vector.broadcast %cst_18 : f32 to vector<4x64xf32>
    %56 = arith.mulf %55, %54 : vector<4x64xf32>
    %57 = math.tanh %56 : vector<4x64xf32>
    %cst_19 = arith.constant 1.000000e+00 : f32
    %58 = vector.broadcast %cst_19 : f32 to vector<4x64xf32>
    %59 = arith.addf %58, %57 : vector<4x64xf32>
    %60 = arith.mulf %49, %59 : vector<4x64xf32>
    %c0_20 = arith.constant 0 : index
    %c0_21 = arith.constant 0 : index
    %61 = vector.load %arg6[%c0_20, %c0_21] : memref<64x128xf32, #tpu.memory_space<vmem>>, vector<64x128xf32>
    %cst_22 = arith.constant dense<0.000000e+00> : vector<4x128xf32>
    %62 = tpu.matmul %60, %61, %cst_22 {dimension_numbers = #tpu.dot_dimension_numbers<[1], [0], [0], [1], [0, 0, 1, 1], [], []>} : vector<4x64xf32>, vector<64x128xf32>, vector<4x128xf32> -> vector<4x128xf32>
    %c0_23 = arith.constant 0 : index
    %c0_24 = arith.constant 0 : index
    %63 = vector.load %arg7[%c0_23, %c0_24] : memref<1x128xf32, #tpu.memory_space<vmem>>, vector<1x128xf32>
    %64 = vector.broadcast %63 : vector<1x128xf32> to vector<4x128xf32>
    %65 = arith.addf %62, %64 : vector<4x128xf32>
    %cst_25 = arith.constant 5.000000e-01 : f32
    %66 = vector.broadcast %cst_25 : f32 to vector<4x128xf32>
    %67 = arith.mulf %66, %65 : vector<4x128xf32>
    %cst_26 = arith.constant 4.471500e-02 : f32
    %68 = vector.broadcast %cst_26 : f32 to vector<4x128xf32>
    %69 = arith.mulf %68, %65 : vector<4x128xf32>
    %70 = arith.mulf %69, %65 : vector<4x128xf32>
    %71 = arith.mulf %70, %65 : vector<4x128xf32>
    %72 = arith.addf %65, %71 : vector<4x128xf32>
    %cst_27 = arith.constant 0.797884583 : f32
    %73 = vector.broadcast %cst_27 : f32 to vector<4x128xf32>
    %74 = arith.mulf %73, %72 : vector<4x128xf32>
    %75 = math.tanh %74 : vector<4x128xf32>
    %cst_28 = arith.constant 1.000000e+00 : f32
    %76 = vector.broadcast %cst_28 : f32 to vector<4x128xf32>
    %77 = arith.addf %76, %75 : vector<4x128xf32>
    %78 = arith.mulf %67, %77 : vector<4x128xf32>
    %c0_29 = arith.constant 0 : index
    %c0_30 = arith.constant 0 : index
    %79 = vector.load %arg8[%c0_29, %c0_30] : memref<128x256xbf16, #tpu.memory_space<vmem>>, vector<128x256xbf16>
    %80 = arith.truncf %27 : vector<4x128xf32> to vector<4x128xbf16>
    %cst_31 = arith.constant dense<0.000000e+00> : vector<4x256xf32>
    %81 = tpu.matmul %80, %79, %cst_31 {dimension_numbers = #tpu.dot_dimension_numbers<[1], [0], [0], [1], [0, 0, 1, 1], [], []>} : vector<4x128xbf16>, vector<128x256xbf16>, vector<4x256xf32> -> vector<4x256xf32>
    %c0_32 = arith.constant 0 : index
    %c0_33 = arith.constant 0 : index
    %82 = vector.load %arg9[%c0_32, %c0_33] : memref<128x256xbf16, #tpu.memory_space<vmem>>, vector<128x256xbf16>
    %83 = arith.truncf %78 : vector<4x128xf32> to vector<4x128xbf16>
    %cst_34 = arith.constant dense<0.000000e+00> : vector<4x256xf32>
    %84 = tpu.matmul %83, %82, %cst_34 {dimension_numbers = #tpu.dot_dimension_numbers<[1], [0], [0], [1], [0, 0, 1, 1], [], []>} : vector<4x128xbf16>, vector<128x256xbf16>, vector<4x256xf32> -> vector<4x256xf32>
    %85 = arith.addf %81, %84 : vector<4x256xf32>
    %c0_35 = arith.constant 0 : index
    %c0_36 = arith.constant 0 : index
    %86 = vector.load %arg10[%c0_35, %c0_36] : memref<1x256xf32, #tpu.memory_space<vmem>>, vector<1x256xf32>
    %87 = vector.broadcast %86 : vector<1x256xf32> to vector<4x256xf32>
    %88 = arith.addf %85, %87 : vector<4x256xf32>
    %cst_37 = arith.constant 5.000000e-01 : f32
    %89 = vector.broadcast %cst_37 : f32 to vector<4x256xf32>
    %90 = arith.mulf %89, %88 : vector<4x256xf32>
    %cst_38 = arith.constant 4.471500e-02 : f32
    %91 = vector.broadcast %cst_38 : f32 to vector<4x256xf32>
    %92 = arith.mulf %91, %88 : vector<4x256xf32>
    %93 = arith.mulf %92, %88 : vector<4x256xf32>
    %94 = arith.mulf %93, %88 : vector<4x256xf32>
    %95 = arith.addf %88, %94 : vector<4x256xf32>
    %cst_39 = arith.constant 0.797884583 : f32
    %96 = vector.broadcast %cst_39 : f32 to vector<4x256xf32>
    %97 = arith.mulf %96, %95 : vector<4x256xf32>
    %98 = math.tanh %97 : vector<4x256xf32>
    %cst_40 = arith.constant 1.000000e+00 : f32
    %99 = vector.broadcast %cst_40 : f32 to vector<4x256xf32>
    %100 = arith.addf %99, %98 : vector<4x256xf32>
    %101 = arith.mulf %90, %100 : vector<4x256xf32>
    %c0_41 = arith.constant 0 : index
    %c0_42 = arith.constant 0 : index
    %102 = vector.load %arg11[%c0_41, %c0_42] : memref<256x512xbf16, #tpu.memory_space<vmem>>, vector<256x512xbf16>
    %103 = arith.truncf %101 : vector<4x256xf32> to vector<4x256xbf16>
    %cst_43 = arith.constant dense<0.000000e+00> : vector<4x512xf32>
    %104 = tpu.matmul %103, %102, %cst_43 {dimension_numbers = #tpu.dot_dimension_numbers<[1], [0], [0], [1], [0, 0, 1, 1], [], []>} : vector<4x256xbf16>, vector<256x512xbf16>, vector<4x512xf32> -> vector<4x512xf32>
    %c0_44 = arith.constant 0 : index
    %c0_45 = arith.constant 0 : index
    %105 = vector.load %arg12[%c0_44, %c0_45] : memref<1x512xf32, #tpu.memory_space<vmem>>, vector<1x512xf32>
    %106 = vector.broadcast %105 : vector<1x512xf32> to vector<4x512xf32>
    %107 = arith.addf %104, %106 : vector<4x512xf32>
    %cst_46 = arith.constant 5.000000e-01 : f32
    %108 = vector.broadcast %cst_46 : f32 to vector<4x512xf32>
    %109 = arith.mulf %108, %107 : vector<4x512xf32>
    %cst_47 = arith.constant 4.471500e-02 : f32
    %110 = vector.broadcast %cst_47 : f32 to vector<4x512xf32>
    %111 = arith.mulf %110, %107 : vector<4x512xf32>
    %112 = arith.mulf %111, %107 : vector<4x512xf32>
    %113 = arith.mulf %112, %107 : vector<4x512xf32>
    %114 = arith.addf %107, %113 : vector<4x512xf32>
    %cst_48 = arith.constant 0.797884583 : f32
    %115 = vector.broadcast %cst_48 : f32 to vector<4x512xf32>
    %116 = arith.mulf %115, %114 : vector<4x512xf32>
    %117 = math.tanh %116 : vector<4x512xf32>
    %cst_49 = arith.constant 1.000000e+00 : f32
    %118 = vector.broadcast %cst_49 : f32 to vector<4x512xf32>
    %119 = arith.addf %118, %117 : vector<4x512xf32>
    %120 = arith.mulf %109, %119 : vector<4x512xf32>
    %c0_50 = arith.constant 0 : index
    %c0_51 = arith.constant 0 : index
    %121 = vector.load %arg13[%c0_50, %c0_51] : memref<512x256xbf16, #tpu.memory_space<vmem>>, vector<512x256xbf16>
    %122 = arith.truncf %120 : vector<4x512xf32> to vector<4x512xbf16>
    %cst_52 = arith.constant dense<0.000000e+00> : vector<4x256xf32>
    %123 = tpu.matmul %122, %121, %cst_52 {dimension_numbers = #tpu.dot_dimension_numbers<[1], [0], [0], [1], [0, 0, 1, 1], [], []>} : vector<4x512xbf16>, vector<512x256xbf16>, vector<4x256xf32> -> vector<4x256xf32>
    %c0_53 = arith.constant 0 : index
    %c0_54 = arith.constant 0 : index
    %124 = vector.load %arg14[%c0_53, %c0_54] : memref<1x256xf32, #tpu.memory_space<vmem>>, vector<1x256xf32>
    %125 = vector.broadcast %124 : vector<1x256xf32> to vector<4x256xf32>
    %126 = arith.addf %123, %125 : vector<4x256xf32>
    %cst_55 = arith.constant 5.000000e-01 : f32
    %127 = vector.broadcast %cst_55 : f32 to vector<4x256xf32>
    %128 = arith.mulf %127, %126 : vector<4x256xf32>
    %cst_56 = arith.constant 4.471500e-02 : f32
    %129 = vector.broadcast %cst_56 : f32 to vector<4x256xf32>
    %130 = arith.mulf %129, %126 : vector<4x256xf32>
    %131 = arith.mulf %130, %126 : vector<4x256xf32>
    %132 = arith.mulf %131, %126 : vector<4x256xf32>
    %133 = arith.addf %126, %132 : vector<4x256xf32>
    %cst_57 = arith.constant 0.797884583 : f32
    %134 = vector.broadcast %cst_57 : f32 to vector<4x256xf32>
    %135 = arith.mulf %134, %133 : vector<4x256xf32>
    %136 = math.tanh %135 : vector<4x256xf32>
    %cst_58 = arith.constant 1.000000e+00 : f32
    %137 = vector.broadcast %cst_58 : f32 to vector<4x256xf32>
    %138 = arith.addf %137, %136 : vector<4x256xf32>
    %139 = arith.mulf %128, %138 : vector<4x256xf32>
    %c0_59 = arith.constant 0 : index
    %c0_60 = arith.constant 0 : index
    %140 = vector.load %arg15[%c0_59, %c0_60] : memref<256x128xbf16, #tpu.memory_space<vmem>>, vector<256x128xbf16>
    %141 = arith.truncf %139 : vector<4x256xf32> to vector<4x256xbf16>
    %cst_61 = arith.constant dense<0.000000e+00> : vector<4x128xf32>
    %142 = tpu.matmul %141, %140, %cst_61 {dimension_numbers = #tpu.dot_dimension_numbers<[1], [0], [0], [1], [0, 0, 1, 1], [], []>} : vector<4x256xbf16>, vector<256x128xbf16>, vector<4x128xf32> -> vector<4x128xf32>
    %c0_62 = arith.constant 0 : index
    %c0_63 = arith.constant 0 : index
    %143 = vector.load %arg16[%c0_62, %c0_63] : memref<1x128xf32, #tpu.memory_space<vmem>>, vector<1x128xf32>
    %144 = vector.broadcast %143 : vector<1x128xf32> to vector<4x128xf32>
    %145 = arith.addf %142, %144 : vector<4x128xf32>
    %c0_64 = arith.constant 0 : index
    %c0_65 = arith.constant 0 : index
    %146 = vector.load %arg17[%c0_64, %c0_65] : memref<4x128xf32, #tpu.memory_space<vmem>>, vector<4x128xf32>
    tpu.vector_store %arg17[%c0_64, %c0_65], %145 {strides = array<i32>} : memref<4x128xf32, #tpu.memory_space<vmem>>, vector<4x128xf32>,
    return
  }
  func.func @transform_0(%arg0: i32) -> (i32, i32) {
    %c0_i32 = arith.constant 0 : i32
    %c0_i32_0 = arith.constant 0 : i32
    return %arg0, %c0_i32 : i32, i32
  }
  func.func @transform_1(%arg0: i32) -> (i32, i32) {
    %c0_i32 = arith.constant 0 : i32
    %c0_i32_0 = arith.constant 0 : i32
    %c0_i32_1 = arith.constant 0 : i32
    return %c0_i32, %c0_i32_0 : i32, i32
  }
  func.func @transform_2(%arg0: i32) -> (i32, i32) {
    %c0_i32 = arith.constant 0 : i32
    %c0_i32_0 = arith.constant 0 : i32
    %c0_i32_1 = arith.constant 0 : i32
    return %c0_i32, %c0_i32_0 : i32, i32
  }
  func.func @transform_3(%arg0: i32) -> (i32, i32) {
    %c0_i32 = arith.constant 0 : i32
    %c0_i32_0 = arith.constant 0 : i32
    %c0_i32_1 = arith.constant 0 : i32
    return %c0_i32, %c0_i32_0 : i32, i32
  }
  func.func @transform_4(%arg0: i32) -> (i32, i32) {
    %c0_i32 = arith.constant 0 : i32
    %c0_i32_0 = arith.constant 0 : i32
    %c0_i32_1 = arith.constant 0 : i32
    return %c0_i32, %c0_i32_0 : i32, i32
  }
  func.func @transform_5(%arg0: i32) -> (i32, i32) {
    %c0_i32 = arith.constant 0 : i32
    %c0_i32_0 = arith.constant 0 : i32
    %c0_i32_1 = arith.constant 0 : i32
    return %c0_i32, %c0_i32_0 : i32, i32
  }
  func.func @transform_6(%arg0: i32) -> (i32, i32) {
    %c0_i32 = arith.constant 0 : i32
    %c0_i32_0 = arith.constant 0 : i32
    %c0_i32_1 = arith.constant 0 : i32
    return %c0_i32, %c0_i32_0 : i32, i32
  }
  func.func @transform_7(%arg0: i32) -> (i32, i32) {
    %c0_i32 = arith.constant 0 : i32
    %c0_i32_0 = arith.constant 0 : i32
    %c0_i32_1 = arith.constant 0 : i32
    return %c0_i32, %c0_i32_0 : i32, i32
  }
  func.func @transform_8(%arg0: i32) -> (i32, i32) {
    %c0_i32 = arith.constant 0 : i32
    %c0_i32_0 = arith.constant 0 : i32
    %c0_i32_1 = arith.constant 0 : i32
    return %c0_i32, %c0_i32_0 : i32, i32
  }
  func.func @transform_9(%arg0: i32) -> (i32, i32) {
    %c0_i32 = arith.constant 0 : i32
    %c0_i32_0 = arith.constant 0 : i32
    %c0_i32_1 = arith.constant 0 : i32
    return %c0_i32, %c0_i32_0 : i32, i32
  }
  func.func @transform_10(%arg0: i32) -> (i32, i32) {
    %c0_i32 = arith.constant 0 : i32
    %c0_i32_0 = arith.constant 0 : i32
    %c0_i32_1 = arith.constant 0 : i32
    return %c0_i32, %c0_i32_0 : i32, i32
  }
  func.func @transform_11(%arg0: i32) -> (i32, i32) {
    %c0_i32 = arith.constant 0 : i32
    %c0_i32_0 = arith.constant 0 : i32
    %c0_i32_1 = arith.constant 0 : i32
    return %c0_i32, %c0_i32_0 : i32, i32
  }
  func.func @transform_12(%arg0: i32) -> (i32, i32) {
    %c0_i32 = arith.constant 0 : i32
    %c0_i32_0 = arith.constant 0 : i32
    %c0_i32_1 = arith.constant 0 : i32
    return %c0_i32, %c0_i32_0 : i32, i32
  }
  func.func @transform_13(%arg0: i32) -> (i32, i32) {
    %c0_i32 = arith.constant 0 : i32
    %c0_i32_0 = arith.constant 0 : i32
    %c0_i32_1 = arith.constant 0 : i32
    return %c0_i32, %c0_i32_0 : i32, i32
  }
  func.func @transform_14(%arg0: i32) -> (i32, i32) {
    %c0_i32 = arith.constant 0 : i32
    %c0_i32_0 = arith.constant 0 : i32
    %c0_i32_1 = arith.constant 0 : i32
    return %c0_i32, %c0_i32_0 : i32, i32
  }
  func.func @transform_15(%arg0: i32) -> (i32, i32) {
    %c0_i32 = arith.constant 0 : i32
    %c0_i32_0 = arith.constant 0 : i32
    %c0_i32_1 = arith.constant 0 : i32
    return %c0_i32, %c0_i32_0 : i32, i32
  }
  func.func @transform_16(%arg0: i32) -> (i32, i32) {
    %c0_i32 = arith.constant 0 : i32
    %c0_i32_0 = arith.constant 0 : i32
    return %arg0, %c0_i32 : i32, i32
  }
}

</mosaic_0001>

<bundles_post_ra>
// kernel: tpu_custom_call.1
= control target key start
LH: loop header
LB: loop body
LE: loop exit
PB: predicated region body
PF: predicated region fallthrough
CT: control target
= control target key end

     0   :  { %s2938_s0 = inlined_call_operand.hbm [shape: f32[4,5], index: 0, kind: input, shape index: {}]   ;;  %s2939_s1 = inlined_call_operand.vmem [shape: f32[2,128], index: 1, kind: input, shape index: {}]   ;;  %s2940_s2 = inlined_call_operand.vmem [shape: f32[1,128], index: 2, kind: input, shape index: {}]   ;;  %s2941_s3 = inlined_call_operand.vmem [shape: f32[3,64], index: 3, kind: input, shape index: {}]   ;;  %s2942_s4 = inlined_call_operand.hbm [shape: f32[1,64], index: 4, kind: input, shape index: {}]   ;;  %s2943_s5 = inlined_call_operand.hbm [shape: f32[64,128], index: 5, kind: input, shape index: {}]   ;;  %s2944_s6 = inlined_call_operand.vmem [shape: f32[1,128], index: 6, kind: input, shape index: {}]   ;;  %s2945_s7 = inlined_call_operand.hbm [shape: bf16[128,256], index: 7, kind: input, shape index: {}]   ;;  %s2946_s8 = inlined_call_operand.hbm [shape: bf16[128,256], index: 8, kind: input, shape index: {}]   ;;  %s2947_s9 = inlined_call_operand.vmem [shape: f32[1,256], index: 9, kind: input, shape index: {}]   ;;  %s2948_s10 = inlined_call_operand.hbm [shape: bf16[256,512], index: 10, kind: input, shape index: {}]   ;;  %s2949_s11 = inlined_call_operand.vmem [shape: f32[1,512], index: 11, kind: input, shape index: {}]   ;;  %s2950_s12 = inlined_call_operand.hbm [shape: bf16[512,256], index: 12, kind: input, shape index: {}]   ;;  %s2951_s13 = inlined_call_operand.vmem [shape: f32[1,256], index: 13, kind: input, shape index: {}]   ;;  %s2952_s14 = inlined_call_operand.hbm [shape: bf16[256,128], index: 14, kind: input, shape index: {}]   ;;  %s2953_s15 = inlined_call_operand.vmem [shape: f32[1,128], index: 15, kind: input, shape index: {}]   ;;  %s2954_s16 = inlined_call_operand.hbm [shape: f32[4,128], index: 16, kind: output, shape index: {}]  }
   0x1   :  { %2960 = sst [smem:[#allocation23_spill]] %s2938_s0 }
   0x2   :  { %21 = vsyncpa [#allocation3], 0 }
   0x3   :  { %22 = vsyncpa [#allocation6], 0 }
   0x4   :  { %23 = vsyncpa [#allocation9], 0 }
   0x5   :  { %24 = vsyncpa [#allocation12], 0 }
   0x6   :  { %25 = vsyncpa [#allocation15], 0 }
   0x7   :  { %26 = vsyncpa [#allocation4], 0  ;;  %s2649_s21 = smov [#allocation5]   ;;  %s2439_s25 = scalar_lea.hbm %s2942_s4, 16 }
   0x8   :  { %s49_s22 = sshll.u32 %s2649_s21, 4  ;;  %p2440_p0 = scmp.ne.s32.totalorder %s2942_s4, %s2439_s25  ;;  %s50_s22 = int_to_ptr.vmem [resolvable:$true] %s49_s22 }
   0x9   :  { %p2443_p1 = scmp.lt.u32.totalorder %s2439_s25, %s2942_s4 }
   0xb   :  { %p2445_p2 = pnand %p2443_p1, %p2440_p0 }
   0xd   :  { %2448 = shalt.err (!%p2445_p2)
}
   0xe   :  { %s2449_s30 = scalar_lea.vmem %s50_s22, 16  ;;  %s2453_s0 = scalar_lea.vmem %s50_s22, 32 }
   0xf   :  { %p2450_p3 = scmp.ne.s32.totalorder %s50_s22, %s2449_s30  ;;  %p2454_p4 = scmp.lt.s32.totalorder %s50_s22, %s50_s22 }
  0x10   :  { %p2455_p5 = scmp.lt.s32.totalorder %s2453_s0, %s2449_s30 }
  0x12   :  { %p2456_p6 = por %p2455_p5, %p2454_p4 }
  0x14   :  { %p2457_p7 = pnand %p2456_p6, %p2450_p3 }
  0x16   :  { %2460 = shalt.err (!%p2457_p7)
}
  0x17   :  { %52 = dma.hbm_to_vmem [thread:$0]  %s2942_s4, 16, %s50_s22, [#allocation6]  }
  0x18   :  { %s2650_s19 = smov [#allocation8]   ;;  %s2651_s21 = smov [#allocation11]  }
  0x19   :  { %s72_s20 = sshll.u32 %s2650_s19, 4  ;;  %s98_s23 = sshll.u32 %s2651_s21, 4  ;;  %s73_s20 = int_to_ptr.vmem [resolvable:$true] %s72_s20  ;;  %s99_s23 = int_to_ptr.vmem [resolvable:$true] %s98_s23 }
  0x1a   :  { %s2461_s26 = scalar_lea.hbm %s2945_s7, 2048 }
  0x1b   :  { %p2462_p8 = scmp.ne.s32.totalorder %s2945_s7, %s2461_s26  ;;  %p2465_p9 = scmp.lt.u32.totalorder %s2461_s26, %s2945_s7 }
  0x1d   :  { %p2467_p10 = pnand %p2465_p9, %p2462_p8 }
  0x1f   :  { %2470 = shalt.err (!%p2467_p10)
}
  0x20   :  { %s2471_s4 = scalar_lea.vmem %s73_s20, 2048  ;;  %p2476_p12 = scmp.lt.s32.totalorder %s73_s20, %s73_s20 }
  0x21   :  { %p2472_p11 = scmp.ne.s32.totalorder %s73_s20, %s2471_s4  ;;  %p2477_p13 = scmp.lt.s32.totalorder %s2471_s4, %s2471_s4 }
  0x23   :  { %p2478_p0 = por %p2477_p13, %p2476_p12 }
  0x25   :  { %p2479_p1 = pnand %p2478_p0, %p2472_p11 }
  0x27   :  { %2482 = shalt.err (!%p2479_p1)
}
  0x28   :  { %s2956_s22 = smov 128   ;;  %s2958_s0 = smov 8  }
  0x29   :  { %78 = dma.hbm_to_vmem [thread:$0]  %s2945_s7, 2048, %s73_s20, [#allocation9], %s2956_s22, %s2956_s22, %s2958_s0  }
  0x2a   :  { %s2483_s24 = scalar_lea.hbm %s2948_s10, 8192 }
  0x2b   :  { %p2484_p2 = scmp.ne.s32.totalorder %s2948_s10, %s2483_s24  ;;  %p2487_p3 = scmp.lt.u32.totalorder %s2483_s24, %s2948_s10 }
  0x2d   :  { %p2489_p4 = pnand %p2487_p3, %p2484_p2 }
  0x2f   :  { %2492 = shalt.err (!%p2489_p4)
}
  0x30   :  { %s2493_s29 = scalar_lea.vmem %s99_s23, 8192  ;;  %p2498_p6 = scmp.lt.s32.totalorder %s99_s23, %s99_s23 }
  0x31   :  { %p2494_p5 = scmp.ne.s32.totalorder %s99_s23, %s2493_s29  ;;  %p2499_p7 = scmp.lt.s32.totalorder %s2493_s29, %s2493_s29 }
  0x33   :  { %p2500_p8 = por %p2499_p7, %p2498_p6 }
  0x35   :  { %p2501_p9 = pnand %p2500_p8, %p2494_p5 }
  0x37   :  { %2504 = shalt.err (!%p2501_p9)
}
  0x38   :  { %s2654_s7 = smov 256   ;;  %s2655_s20 = smov 16  }
  0x39   :  { %104 = dma.hbm_to_vmem [thread:$0]  %s2948_s10, 8192, %s99_s23, [#allocation12], %s2654_s7, %s2654_s7, %s2655_s20  }
  0x3a   :  { %s2656_s17 = smov [#allocation2]   ;;  %s2657_s19 = smov [#allocation7]  }
  0x3b   :  { %s33_s18 = sshll.u32 %s2656_s17, 4  ;;  %s58_s21 = sshll.u32 %s2657_s19, 4  ;;  %s34_s18 = int_to_ptr.vmem [resolvable:$true] %s33_s18  ;;  %s59_s21 = int_to_ptr.vmem [resolvable:$true] %s58_s21 }
  0x3c   :  { %s2961_s26 = sld [smem:[#allocation23_spill]] }
  0x42   :  { %s2505_s27 = scalar_lea.hbm %s2961_s26, 64 }
  0x43   :  { %p2506_p10 = scmp.ne.s32.totalorder %s2961_s26, %s2505_s27  ;;  %p2509_p11 = scmp.lt.u32.totalorder %s2505_s27, %s2961_s26 }
  0x45   :  { %p2511_p12 = pnand %p2509_p11, %p2506_p10 }
  0x47   :  { %2514 = shalt.err (!%p2511_p12)
}
  0x48   :  { %s2515_s10 = scalar_lea.vmem %s34_s18, 64  ;;  %p2520_p0 = scmp.lt.s32.totalorder %s34_s18, %s34_s18 }
  0x49   :  { %p2516_p13 = scmp.ne.s32.totalorder %s34_s18, %s2515_s10  ;;  %p2521_p1 = scmp.lt.s32.totalorder %s2515_s10, %s2515_s10 }
  0x4b   :  { %p2522_p2 = por %p2521_p1, %p2520_p0 }
  0x4d   :  { %p2523_p3 = pnand %p2522_p2, %p2516_p13 }
  0x4f   :  { %2526 = shalt.err (!%p2523_p3)
}
  0x50   :  { %36 = dma.hbm_to_vmem [thread:$0]  %s2961_s26, 64, %s34_s18, [#allocation3]  }
  0x51   :  { %s2527_s4 = scalar_lea.hbm %s2943_s5, 1024 }
  0x52   :  { %p2528_p4 = scmp.ne.s32.totalorder %s2943_s5, %s2527_s4  ;;  %p2531_p5 = scmp.lt.u32.totalorder %s2527_s4, %s2943_s5 }
  0x54   :  { %p2533_p6 = pnand %p2531_p5, %p2528_p4 }
  0x56   :  { %2536 = shalt.err (!%p2533_p6)
}
  0x57   :  { %s2537_s24 = scalar_lea.vmem %s59_s21, 1024  ;;  %p2542_p8 = scmp.lt.s32.totalorder %s59_s21, %s59_s21 }
  0x58   :  { %p2538_p7 = scmp.ne.s32.totalorder %s59_s21, %s2537_s24  ;;  %p2543_p9 = scmp.lt.s32.totalorder %s2537_s24, %s2537_s24 }
  0x5a   :  { %p2544_p10 = por %p2543_p9, %p2542_p8 }
  0x5c   :  { %p2545_p11 = pnand %p2544_p10, %p2538_p7 }
  0x5e   :  { %2548 = shalt.err (!%p2545_p11)
}
  0x5f   :  { %s2962_s18 = smov 8   ;;  %s2963_s25 = smov 128  }
  0x60   :  { %64 = dma.hbm_to_vmem [thread:$0]  %s2943_s5, 1024, %s59_s21, [#allocation6], %s2963_s25, %s2963_s25, %s2962_s18  }
  0x61   :  { %s2658_s28 = smov [#allocation10]   ;;  %s2659_s10 = smov [#allocation13]  }
  0x62   :  { %s84_s29 = sshll.u32 %s2658_s28, 4  ;;  %s112_s23 = sshll.u32 %s2659_s10, 4  ;;  %s85_s29 = int_to_ptr.vmem [resolvable:$true] %s84_s29  ;;  %s113_s23 = int_to_ptr.vmem [resolvable:$true] %s112_s23 }
  0x63   :  { %s2549_s30 = scalar_lea.hbm %s2946_s8, 2048 }
  0x64   :  { %p2550_p12 = scmp.ne.s32.totalorder %s2946_s8, %s2549_s30  ;;  %p2553_p13 = scmp.lt.u32.totalorder %s2549_s30, %s2946_s8 }
  0x66   :  { %p2555_p0 = pnand %p2553_p13, %p2550_p12 }
  0x68   :  { %2558 = shalt.err (!%p2555_p0)
}
  0x69   :  { %s2559_s5 = scalar_lea.vmem %s85_s29, 2048  ;;  %p2564_p2 = scmp.lt.s32.totalorder %s85_s29, %s85_s29 }
  0x6a   :  { %p2560_p1 = scmp.ne.s32.totalorder %s85_s29, %s2559_s5  ;;  %p2565_p3 = scmp.lt.s32.totalorder %s2559_s5, %s2559_s5 }
  0x6c   :  { %p2566_p4 = por %p2565_p3, %p2564_p2 }
  0x6e   :  { %p2567_p5 = pnand %p2566_p4, %p2560_p1 }
  0x70   :  { %2570 = shalt.err (!%p2567_p5)
}
  0x71   :  { %90 = dma.hbm_to_vmem [thread:$0]  %s2946_s8, 2048, %s85_s29, [#allocation9], %s2963_s25, %s2963_s25, %s2962_s18  }
  0x72   :  { %s2571_s27 = scalar_lea.hbm %s2950_s12, 8192 }
  0x73   :  { %p2572_p6 = scmp.ne.s32.totalorder %s2950_s12, %s2571_s27  ;;  %p2575_p7 = scmp.lt.u32.totalorder %s2571_s27, %s2950_s12 }
  0x75   :  { %p2577_p8 = pnand %p2575_p7, %p2572_p6 }
  0x77   :  { %2580 = shalt.err (!%p2577_p8)
}
  0x78   :  { %s2581_s30 = scalar_lea.vmem %s113_s23, 8192  ;;  %p2586_p10 = scmp.lt.s32.totalorder %s113_s23, %s113_s23 }
  0x79   :  { %p2582_p9 = scmp.ne.s32.totalorder %s113_s23, %s2581_s30  ;;  %p2587_p11 = scmp.lt.s32.totalorder %s2581_s30, %s2581_s30 }
  0x7b   :  { %p2588_p12 = por %p2587_p11, %p2586_p10 }
  0x7d   :  { %p2589_p13 = pnand %p2588_p12, %p2582_p9 }
  0x7f   :  { %2592 = shalt.err (!%p2589_p13)
}
  0x80   :  { %118 = dma.hbm_to_vmem [thread:$0]  %s2950_s12, 8192, %s113_s23, [#allocation12], %s2963_s25, %s2963_s25, %s2962_s18  }
  0x81   :  { %s2660_s4 = smov [#allocation14]   ;;  %s2593_s5 = scalar_lea.hbm %s2952_s14, 2048 }
  0x82   :  { %s126_s22 = sshll.u32 %s2660_s4, 4  ;;  %p2594_p0 = scmp.ne.s32.totalorder %s2952_s14, %s2593_s5  ;;  %s127_s22 = int_to_ptr.vmem [resolvable:$true] %s126_s22 }
  0x83   :  { %p2597_p1 = scmp.lt.u32.totalorder %s2593_s5, %s2952_s14 }
  0x85   :  { %p2599_p2 = pnand %p2597_p1, %p2594_p0 }
  0x87   :  { %2602 = shalt.err (!%p2599_p2)
}
  0x88   :  { %s2603_s27 = scalar_lea.vmem %s127_s22, 2048  ;;  %p2608_p4 = scmp.lt.s32.totalorder %s127_s22, %s127_s22 }
  0x89   :  { %p2604_p3 = scmp.ne.s32.totalorder %s127_s22, %s2603_s27  ;;  %p2609_p5 = scmp.lt.s32.totalorder %s2603_s27, %s2603_s27 }
  0x8b   :  { %p2610_p6 = por %p2609_p5, %p2608_p4 }
  0x8d   :  { %p2611_p7 = pnand %p2610_p6, %p2604_p3 }
  0x8f   :  { %2614 = shalt.err (!%p2611_p7)
}
  0x90   :  { %s2661_s12 = smov 64   ;;  %s2662_s18 = smov 4  }
  0x91   :  { %132 = dma.hbm_to_vmem [thread:$0]  %s2952_s14, 2048, %s127_s22, [#allocation15], %s2661_s12, %s2661_s12, %s2662_s18  }
  0x92   :  { %2637 = dma.done.wait [#allocation3], 64  }
  0x93   :  { %2638 = vsyncadd [#allocation3], 4294967232 }
  0x94   :  { %2639 = dma.done.wait [#allocation6], 1040  }
  0x95   :  { %2640 = vsyncadd [#allocation6], 4294966256 }
  0x96   :  { %2641 = dma.done.wait [#allocation9], 4096  }
  0x97   :  { %2642 = vsyncadd [#allocation9], 4294963200 }
  0x98   :  { %2643 = dma.done.wait [#allocation12], 16384  }
  0x99   :  { %2644 = vsyncadd [#allocation12], 4294950912 }
  0x9a   :  { %2645 = dma.done.wait [#allocation15], 2048  }
  0x9b   :  { %2646 = vsyncadd [#allocation15], 4294965248  ;;  %v2663_v0 = vmov 2   ;;  %v2664_v1 = vmov 4   ;;  %v160_v2 = vld [vmem:[#allocation2] sm:$0xf] }
  0x9c   :  { %2155 = vset.pattern.permute.xlu0 %v2663_v0  ;;  %2157 = vset.pattern.permute.xlu1 %v2664_v1  ;;  %v2665_v3 = vmov 3   ;;  %v249_v4 = vld [vmem:[#allocation7] sm:$0xff]  ;;  %v250_v5 = vld [vmem:[#allocation7 + $0x8] sm:$0xff]  ;;  %v251_v6 = vld [vmem:[#allocation7 + $0x10] sm:$0xff]  ;;  %v2666_v7 = vmov 0.0|0.0   ;;  %vm2667_vm0 = vmmov 0  }
  0x9d   :  { %203 = vperm.xlu0 %2155, %v160_v2   ;;  %231 = vperm.xlu1 %2157, %v160_v2   ;;  %v2115_v8 = vpack.c.bf16 %v250_v5, %v249_v4  ;;  %v252_v9 = vld [vmem:[#allocation7 + $0x18] sm:$0xff]  ;;  %v2668_v10 = vmov 0.0   ;;  %v253_v11 = vld [vmem:[#allocation7 + $0x20] sm:$0xff]  ;;  %v254_v12 = vld [vmem:[#allocation7 + $0x28] sm:$0xff]  ;;  %v2669_v19 = vmov 0   ;;  %v2670_v20 = vmov 1  }
  0x9e   :  { %2114 = vmatprep.subr.bf16.mxu0 %v2666_v7  ;;  %2111 = vmatprep.mubr.msk.f32.mxu0 %vm2667_vm0, %v2668_v10  ;;  %v2118_v13 = vpack.c.bf16 %v252_v9, %v251_v6  ;;  %v255_v14 = vld [vmem:[#allocation7 + $0x30] sm:$0xff]  ;;  %v256_v15 = vld [vmem:[#allocation7 + $0x38] sm:$0xff]  ;;  %v2121_v16 = vpack.c.bf16 %v254_v12, %v253_v11  ;;  %v2163_v18 = vld [vmem:[#allocation10 + $0x4] ss:$8 sps:$4 sm:$0xff]   ;;  %vm264_vm1 = vcmask 523264   ;;  %s2671_s24 = smov [#allocation16]  }
  0x9f   :  { %2116 = vmatpush3.bf16.msra.mxu0 %v2115_v8  ;;  %v2124_v17 = vpack.c.bf16 %v256_v15, %v255_v14  ;;  %v1881_v21 = vld [vmem:[%s2941_s3] ss:$0 sm:$0xff]  ;;  %v1882_v24 = vld [vmem:[#allocation5] ss:$0 sm:$0xff]  ;;  %v1883_v25 = vld [vmem:[%s2941_s3 + $0x1] ss:$0 sm:$0xff] }
  0xa0   :  { %2117 = vmatprep.subr.bf16.mxu0 %v2666_v7  ;;  %v1884_v26 = vld [vmem:[%s2941_s3 + $0x2] ss:$0 sm:$0xff]  ;;  %v2161_v42 = vld [vmem:[#allocation10] ss:$8 sps:$4 sm:$0xff]   ;;  %v2164_v45 = vld [vmem:[#allocation10 + $0x10] ss:$8 sps:$4 sm:$0xff]  }
  0xa1   :  { %2156 = vset.pattern.permute.xlu0 %v2665_v3  ;;  %2158 = vset.pattern.permute.xlu1 %v2669_v19  ;;  %v2166_v44 = vld [vmem:[#allocation10 + $0x14] ss:$8 sps:$4 sm:$0xff]   ;;  %v2169_v46 = vld [vmem:[#allocation10 + $0x24] ss:$8 sps:$4 sm:$0xff]   ;;  %v2167_v47 = vld [vmem:[#allocation10 + $0x20] ss:$8 sps:$4 sm:$0xff]  }
  0xa2   :  { %220 = vperm.xlu0 %2156, %v160_v2   ;;  %165 = vperm.xlu1 %2158, %v160_v2   ;;  %v2172_v48 = vld [vmem:[#allocation10 + $0x34] ss:$8 sps:$4 sm:$0xff]   ;;  %v2170_v49 = vld [vmem:[#allocation10 + $0x30] ss:$8 sps:$4 sm:$0xff]   ;;  %v2175_v50 = vld [vmem:[#allocation10 + $0x44] ss:$8 sps:$4 sm:$0xff]  }
  0xa3   :  { %2119 = vmatpush3.bf16.msra.mxu0 %v2118_v13  ;;  %v2173_v51 = vld [vmem:[#allocation10 + $0x40] ss:$8 sps:$4 sm:$0xff]   ;;  %v2178_v52 = vld [vmem:[#allocation10 + $0x54] ss:$8 sps:$4 sm:$0xff]   ;;  %v2176_v53 = vld [vmem:[#allocation10 + $0x50] ss:$8 sps:$4 sm:$0xff]  }
  0xa4   :  { %2120 = vmatprep.subr.bf16.mxu0 %v2666_v7  ;;  %v2181_v54 = vld [vmem:[#allocation10 + $0x64] ss:$8 sps:$4 sm:$0xff]   ;;  %v2179_v55 = vld [vmem:[#allocation10 + $0x60] ss:$8 sps:$4 sm:$0xff]   ;;  %v2184_v56 = vld [vmem:[#allocation10 + $0x74] ss:$8 sps:$4 sm:$0xff]  }
  0xa5   :  { %v2182_v57 = vld [vmem:[#allocation10 + $0x70] ss:$8 sps:$4 sm:$0xff]   ;;  %v2187_v58 = vld [vmem:[#allocation8 + $0x4] ss:$8 sps:$4 sm:$0xff]   ;;  %s1865_s26 = sshll.u32 %s2671_s24, 4  ;;  %s1866_s26 = int_to_ptr.vmem [resolvable:$true] %s1865_s26 }
  0xa6   :  { %2160 = vset.pattern.permute.xlu0 %v2664_v1  ;;  %2159 = vset.pattern.permute.xlu1 %v2670_v20  ;;  %v1885_v59 = vld [vmem:[%s2944_s6] ss:$0 sm:$0xff]  ;;  %v1880_v6 = vld [vmem:[%s2939_s1 + $0x1] ss:$0 sm:$0xff]  ;;  %s2615_s27 = scalar_lea.vmem %s1866_s26, 64  ;;  %p2620_p9 = scmp.lt.s32.totalorder %s1866_s26, %s1866_s26 }
  0xa7   :  { %2122 = vmatpush3.bf16.msra.mxu0 %v2121_v16  ;;  %182 = vperm.xlu1 %2159, %v160_v2   ;;  %v1878_v1 = vld [vmem:[%s2939_s1] ss:$0 sm:$0xff]  ;;  %p2616_p8 = scmp.ne.s32.totalorder %s1866_s26, %s2615_s27  ;;  %p2621_p10 = scmp.lt.s32.totalorder %s2615_s27, %s2615_s27 }
  0xa8   :  { %2123 = vmatprep.subr.bf16.mxu0 %v2666_v7  ;;  %v1879_v5 = vld [vmem:[%s2940_s2] ss:$0 sm:$0xff] }
  0xa9   :  { %p2622_p11 = por %p2621_p10, %p2620_p9 }
  0xab   :  { %2125 = vmatpush3.bf16.msra.mxu0 %v2124_v17  ;;  %p2623_p12 = pnand %p2622_p11, %p2616_p8 }
  0xac   :  { %461 = vmatprep.subr.bf16.mxu0 %v2163_v18 }
 0x11c   :  { %v204_v22 = vpop.permute.xlu0 %203  ;;  %v232_v27 = vpop.permute.xlu1 %231 }
 0x11d   :  { %v210_v23 = vmul.f32 %v1881_v21, %v204_v22  ;;  %v238_v31 = vmul.f32 %v1884_v26, %v232_v27  ;;  %v2185_v21 = vld [vmem:[#allocation8] ss:$8 sps:$4 sm:$0xff]   ;;  %v2193_v26 = vld [vmem:[#allocation8 + $0x24] ss:$8 sps:$4 sm:$0xff]  }
 0x11e   :  { %v2191_v27 = vld [vmem:[#allocation8 + $0x20] ss:$8 sps:$4 sm:$0xff]  }
 0x11f   :  { %v217_v29 = vadd.f32 %v1882_v24, %v210_v23  ;;  %v2190_v23 = vld [vmem:[#allocation8 + $0x14] ss:$8 sps:$4 sm:$0xff]   ;;  %v2188_v24 = vld [vmem:[#allocation8 + $0x10] ss:$8 sps:$4 sm:$0xff]  }
 0x121   :  { %v221_v28 = vpop.permute.xlu0 %220  ;;  %v166_v63 = vpop.permute.xlu1 %165 }
 0x122   :  { %v227_v30 = vmul.f32 %v1883_v25, %v221_v28  ;;  %v172_v4 = vmul.f32 %v1878_v1, %v166_v63  ;;  %v2239_v63 = vld [vmem:[#allocation11 + $0xa4] ss:$16 sps:$4 sm:$0xff]   ;;  %v2241_v1 = vld [vmem:[#allocation11 + $0xa8] ss:$16 sps:$4 sm:$0xff]  }
 0x124   :  { %v228_v32 = vadd.f32 %v227_v30, %v217_v29  ;;  %v179_v9 = vadd.f32 %v1879_v5, %v172_v4  ;;  %v2196_v29 = vld [vmem:[#allocation8 + $0x34] ss:$8 sps:$4 sm:$0xff]   ;;  %v2194_v30 = vld [vmem:[#allocation8 + $0x30] ss:$8 sps:$4 sm:$0xff]  }
 0x125   :  { %v2249_v4 = vld [vmem:[#allocation11 + $0xcc] ss:$16 sps:$4 sm:$0xff]   ;;  %v2247_v5 = vld [vmem:[#allocation11 + $0xc8] ss:$16 sps:$4 sm:$0xff]  }
 0x126   :  { %v239_v33 = vadd.f32 %v238_v31, %v228_v32  ;;  %v183_v7 = vpop.permute.xlu1 %182  ;;  %v2199_v31 = vld [vmem:[#allocation8 + $0x44] ss:$8 sps:$4 sm:$0xff]   ;;  %v2197_v32 = vld [vmem:[#allocation8 + $0x40] ss:$8 sps:$4 sm:$0xff]  }
 0x127   :  { %v189_v10 = vmul.f32 %v1880_v6, %v183_v7  ;;  %v2250_v6 = vld [vmem:[#allocation11 + $0xc0] ss:$16 sps:$4 sm:$0xff]   ;;  %v2251_v7 = vld [vmem:[#allocation11 + $0xe4] ss:$16 sps:$4 sm:$0xff]  }
 0x128   :  { %v241_v34 = vmul.f32 0.044715, %v239_v33  ;;  %v240_v40 = vmul.f32 0.5, %v239_v33 }
 0x129   :  { %v190_v12 = vadd.f32 %v189_v10, %v179_v9  ;;  %v2253_v9 = vld [vmem:[#allocation11 + $0xe8] ss:$16 sps:$4 sm:$0xff]   ;;  %v2256_v10 = vld [vmem:[#allocation11 + $0xe0] ss:$16 sps:$4 sm:$0xff]  }
 0x12a   :  { %v242_v35 = vmul.f32 %v241_v34, %v239_v33  ;;  %v2200_v34 = vld [vmem:[#allocation8 + $0x50] ss:$8 sps:$4 sm:$0xff]  }
 0x12b   :  { %v192_v13 = vmul.f32 0.044715, %v190_v12 }
 0x12c   :  { %v243_v36 = vmul.f32 %v242_v35, %v239_v33 }
 0x12d   :  { %v193_v15 = vmul.f32 %v192_v13, %v190_v12  ;;  %v2261_v13 = vld [vmem:[#allocation11 + $0x10c] ss:$16 sps:$4 sm:$0xff]  }
 0x12e   :  { %v244_v37 = vadd.f32 %v243_v36, %v239_v33  ;;  %v2202_v33 = vld [vmem:[#allocation8 + $0x54] ss:$8 sps:$4 sm:$0xff]   ;;  %v2203_v36 = vld [vmem:[#allocation8 + $0x60] ss:$8 sps:$4 sm:$0xff]  }
 0x12f   :  { %v194_v20 = vmul.f32 %v193_v15, %v190_v12  ;;  %v2263_v15 = vld [vmem:[#allocation11 + $0x124] ss:$16 sps:$4 sm:$0xff]  }
 0x130   :  { %v245_v38 = vmul.f32 0.7978846, %v244_v37  ;;  %v2208_v37 = vld [vmem:[#allocation8 + $0x74] ss:$8 sps:$4 sm:$0xff]  }
 0x131   :  { %v195_v25 = vadd.f32 %v194_v20, %v190_v12  ;;  %v2269_v20 = vld [vmem:[#allocation11 + $0x144] ss:$16 sps:$4 sm:$0xff]  }
 0x132   :  { %2417 = vtanh.f32 %v245_v38  ;;  %v191_v38 = vmul.f32 0.5, %v190_v12  ;;  %v2259_v12 = vld [vmem:[#allocation11 + $0x108] ss:$16 sps:$4 sm:$0xff]  }
 0x133   :  { %v196_v28 = vmul.f32 0.7978846, %v195_v25  ;;  %v2279_v25 = vld [vmem:[#allocation11 + $0x16c] ss:$16 sps:$4 sm:$0xff]  }
 0x13c   :  { %v2418_v39 = vpop.eup %2417 }
 0x13d   :  { %v247_v41 = vadd.f32 1.0, %v2418_v39 }
 0x13f   :  { %v248_v43 = vmul.f32 %v247_v41, %v240_v40  ;;  %v2206_v40 = vld [vmem:[#allocation8 + $0x70] ss:$8 sps:$4 sm:$0xff]  }
 0x141   :  { %2112 = vmatmul.mubr.msk.f32.vlgmr.msra.gmra.mrb[0].mxu0 %vm264_vm1, %v248_v43  ;;  %v2209_v43 = vld [vmem:[#allocation11 + $0x4] ss:$16 sps:$4 sm:$0xff]  }
 0x142   :  { %462 = vmatpush1.bf16.msra.mxu0 %v2161_v42  ;;  %493 = vmatprep.mubr.bf16.mxu0 %v2669_v19 }
 0x143   :  { %463 = vmatprep.subr.bf16.mxu0 %v2166_v44  ;;  %v2213_v44 = vld [vmem:[#allocation11 + $0xc] ss:$16 sps:$4 sm:$0xff]   ;;  %1063 = vmatprep.subr.bf16.mxu1 %v2209_v43 }
 0x144   :  { %v2307_v43 = vld [vmem:[#allocation13 + $0x4] ss:$8 sps:$4 sm:$0xff]  }
 0x146   :  { %464 = vmatpush1.bf16.msra.mxu0 %v2164_v45  ;;  %v2211_v45 = vld [vmem:[#allocation11 + $0x8] ss:$16 sps:$4 sm:$0xff]  }
 0x147   :  { %465 = vmatprep.subr.bf16.mxu0 %v2169_v46  ;;  %v2214_v46 = vld [vmem:[#allocation11] ss:$16 sps:$4 sm:$0xff]  }
 0x148   :  { %1064 = vmatpush1.bf16.msra.mxu1 %v2214_v46 }
 0x14a   :  { %466 = vmatpush1.bf16.msra.mxu0 %v2167_v47  ;;  %v2215_v47 = vld [vmem:[#allocation11 + $0x24] ss:$16 sps:$4 sm:$0xff]  }
 0x14b   :  { %467 = vmatprep.subr.bf16.mxu0 %v2172_v48  ;;  %v2217_v48 = vld [vmem:[#allocation11 + $0x28] ss:$16 sps:$4 sm:$0xff]   ;;  %1065 = vmatprep.subr.bf16.mxu1 %v2215_v47 }
 0x14e   :  { %468 = vmatpush1.bf16.msra.mxu0 %v2170_v49  ;;  %v2219_v49 = vld [vmem:[#allocation11 + $0x2c] ss:$16 sps:$4 sm:$0xff]  }
 0x14f   :  { %469 = vmatprep.subr.bf16.mxu0 %v2175_v50  ;;  %v2220_v50 = vld [vmem:[#allocation11 + $0x20] ss:$16 sps:$4 sm:$0xff]  }
 0x150   :  { %1066 = vmatpush1.bf16.msra.mxu1 %v2220_v50 }
 0x152   :  { %470 = vmatpush1.bf16.msra.mxu0 %v2173_v51  ;;  %v2221_v51 = vld [vmem:[#allocation11 + $0x44] ss:$16 sps:$4 sm:$0xff]  }
 0x153   :  { %471 = vmatprep.subr.bf16.mxu0 %v2178_v52  ;;  %v2225_v52 = vld [vmem:[#allocation11 + $0x4c] ss:$16 sps:$4 sm:$0xff]   ;;  %1067 = vmatprep.subr.bf16.mxu1 %v2221_v51  ;;  %v623_v51 = vld [vmem:[%s2947_s9] sm:$0x3] }
 0x156   :  { %472 = vmatpush1.bf16.msra.mxu0 %v2176_v53  ;;  %v2223_v53 = vld [vmem:[#allocation11 + $0x48] ss:$16 sps:$4 sm:$0xff]  }
 0x157   :  { %473 = vmatprep.subr.bf16.mxu0 %v2181_v54  ;;  %v2226_v54 = vld [vmem:[#allocation11 + $0x40] ss:$16 sps:$4 sm:$0xff]  }
 0x158   :  { %1068 = vmatpush1.bf16.msra.mxu1 %v2226_v54 }
 0x15a   :  { %474 = vmatpush1.bf16.msra.mxu0 %v2179_v55  ;;  %v2227_v55 = vld [vmem:[#allocation11 + $0x64] ss:$16 sps:$4 sm:$0xff]  }
 0x15b   :  { %475 = vmatprep.subr.bf16.mxu0 %v2184_v56  ;;  %v2231_v56 = vld [vmem:[#allocation11 + $0x6c] ss:$16 sps:$4 sm:$0xff]   ;;  %1069 = vmatprep.subr.bf16.mxu1 %v2227_v55 }
 0x15e   :  { %476 = vmatpush1.bf16.msra.mxu0 %v2182_v57  ;;  %v2229_v57 = vld [vmem:[#allocation11 + $0x68] ss:$16 sps:$4 sm:$0xff]  }
 0x15f   :  { %582 = vmatprep.subr.bf16.mxu0 %v2187_v58  ;;  %v2232_v58 = vld [vmem:[#allocation11 + $0x60] ss:$16 sps:$4 sm:$0xff]  }
 0x160   :  { %1070 = vmatpush1.bf16.msra.mxu1 %v2232_v58 }
 0x214   :  { %v334_v60 = vpop.f32.mrb[0].mxu0 }
 0x215   :  { %v335_v61 = vadd.f32 %v1885_v59, %v334_v60  ;;  %v2113_v62 = vpop.f32.mrb[1].mxu0  ;;  %v2233_v59 = vld [vmem:[#allocation11 + $0x84] ss:$16 sps:$4 sm:$0xff]   ;;  %v2237_v60 = vld [vmem:[#allocation11 + $0x8c] ss:$16 sps:$4 sm:$0xff]  }
 0x216   :  { %v2238_v62 = vld [vmem:[#allocation11 + $0x80] ss:$16 sps:$4 sm:$0xff]   ;;  %1071 = vmatprep.subr.bf16.mxu1 %v2233_v59 }
 0x217   :  { %v339_v0 = vmul.f32 0.044715, %v335_v61  ;;  %v338_v16 = vmul.f32 0.5, %v335_v61  ;;  %1072 = vmatpush1.bf16.msra.mxu1 %v2238_v62 }
 0x218   :  { %1073 = vmatprep.subr.bf16.mxu1 %v2239_v63 }
 0x219   :  { %v340_v2 = vmul.f32 %v339_v0, %v335_v61  ;;  %v2243_v0 = vld [vmem:[#allocation11 + $0xac] ss:$16 sps:$4 sm:$0xff]  }
 0x21b   :  { %v341_v3 = vmul.f32 %v340_v2, %v335_v61  ;;  %v2244_v2 = vld [vmem:[#allocation11 + $0xa0] ss:$16 sps:$4 sm:$0xff]  }
 0x21c   :  { %1074 = vmatpush1.bf16.msra.mxu1 %v2244_v2 }
 0x21d   :  { %v342_v8 = vadd.f32 %v341_v3, %v335_v61  ;;  %v2235_v61 = vld [vmem:[#allocation11 + $0x88] ss:$16 sps:$4 sm:$0xff]   ;;  %v2245_v3 = vld [vmem:[#allocation11 + $0xc4] ss:$16 sps:$4 sm:$0xff]  }
 0x21e   :  { %1075 = vmatprep.subr.bf16.mxu1 %v2245_v3 }
 0x21f   :  { %v343_v11 = vmul.f32 0.7978846, %v342_v8  ;;  %v2255_v8 = vld [vmem:[#allocation11 + $0xec] ss:$16 sps:$4 sm:$0xff]  }
 0x220   :  { %1076 = vmatpush1.bf16.msra.mxu1 %v2250_v6 }
 0x221   :  { %2419 = vtanh.f32 %v343_v11  ;;  %1077 = vmatprep.subr.bf16.mxu1 %v2251_v7  ;;  %v2257_v11 = vld [vmem:[#allocation11 + $0x104] ss:$16 sps:$4 sm:$0xff]  }
 0x222   :  { %2421 = vtanh.f32 %v196_v28  ;;  %v2281_v28 = vld [vmem:[#allocation11 + $0x184] ss:$16 sps:$4 sm:$0xff]  }
 0x224   :  { %1078 = vmatpush1.bf16.msra.mxu1 %v2256_v10 }
 0x225   :  { %1079 = vmatprep.subr.bf16.mxu1 %v2257_v11 }
 0x22b   :  { %v2420_v14 = vpop.eup %2419 }
 0x22c   :  { %v345_v17 = vadd.f32 1.0, %v2420_v14  ;;  %v2422_v35 = vpop.eup %2421  ;;  %v2262_v14 = vld [vmem:[#allocation11 + $0x100] ss:$16 sps:$4 sm:$0xff]  }
 0x22d   :  { %v198_v39 = vadd.f32 1.0, %v2422_v35  ;;  %1080 = vmatpush1.bf16.msra.mxu1 %v2262_v14  ;;  %v2293_v35 = vld [vmem:[#allocation11 + $0x1c4] ss:$16 sps:$4 sm:$0xff]  }
 0x22e   :  { %v346_v18 = vmul.f32 %v345_v17, %v338_v16  ;;  %v2267_v16 = vld [vmem:[#allocation11 + $0x12c] ss:$16 sps:$4 sm:$0xff]   ;;  %v2265_v17 = vld [vmem:[#allocation11 + $0x128] ss:$16 sps:$4 sm:$0xff]   ;;  %1081 = vmatprep.subr.bf16.mxu1 %v2263_v15 }
 0x22f   :  { %v199_v41 = vmul.f32 %v198_v39, %v191_v38  ;;  %v2295_v38 = vld [vmem:[#allocation11 + $0x1c8] ss:$16 sps:$4 sm:$0xff]   ;;  %v2299_v39 = vld [vmem:[#allocation11 + $0x1e4] ss:$16 sps:$4 sm:$0xff]  }
 0x230   :  { %v380_v22 = vpack.c.bf16 %v346_v18, %v346_v18  ;;  %v2268_v18 = vld [vmem:[#allocation11 + $0x120] ss:$16 sps:$4 sm:$0xff]  }
 0x231   :  { %v363_v42 = vpack.c.bf16 %v199_v41, %v199_v41  ;;  %1082 = vmatpush1.bf16.msra.mxu1 %v2268_v18  ;;  %v2304_v41 = vld [vmem:[#allocation11 + $0x1e0] ss:$16 sps:$4 sm:$0xff]  }
 0x232   :  { %494 = vmatmul.mubr.bf16.vlgmr.msra.gmra.mrb[4].mxu0 %v380_v22  ;;  %v2274_v22 = vld [vmem:[#allocation11 + $0x140] ss:$16 sps:$4 sm:$0xff]   ;;  %1083 = vmatprep.subr.bf16.mxu1 %v2269_v20 }
 0x233   :  { %583 = vmatpush1.bf16.msra.mxu0 %v2185_v21  ;;  %614 = vmatprep.mubr.bf16.mxu0 %v2669_v19  ;;  %v2205_v19 = vld [vmem:[#allocation8 + $0x64] ss:$8 sps:$4 sm:$0xff]   ;;  %v2305_v18 = vld [vmem:[#allocation13] ss:$8 sps:$4 sm:$0xff]  }
 0x234   :  { %584 = vmatprep.subr.bf16.mxu0 %v2190_v23  ;;  %v2273_v21 = vld [vmem:[#allocation11 + $0x14c] ss:$16 sps:$4 sm:$0xff]   ;;  %v2271_v23 = vld [vmem:[#allocation11 + $0x148] ss:$16 sps:$4 sm:$0xff]  }
 0x235   :  { %1084 = vmatpush1.bf16.msra.mxu1 %v2274_v22  ;;  %v2308_v22 = vld [vmem:[#allocation13 + $0x10] ss:$8 sps:$4 sm:$0xff]  }
 0x237   :  { %585 = vmatpush1.bf16.msra.mxu0 %v2188_v24  ;;  %v2275_v24 = vld [vmem:[#allocation11 + $0x164] ss:$16 sps:$4 sm:$0xff]  }
 0x238   :  { %586 = vmatprep.subr.bf16.mxu0 %v2193_v26  ;;  %v2280_v26 = vld [vmem:[#allocation11 + $0x160] ss:$16 sps:$4 sm:$0xff]   ;;  %1085 = vmatprep.subr.bf16.mxu1 %v2275_v24 }
 0x239   :  { %1086 = vmatpush1.bf16.msra.mxu1 %v2280_v26  ;;  %v2311_v24 = vld [vmem:[#allocation13 + $0x20] ss:$8 sps:$4 sm:$0xff]   ;;  %v2314_v26 = vld [vmem:[#allocation13 + $0x30] ss:$8 sps:$4 sm:$0xff]  }
 0x23a   :  { %1087 = vmatprep.subr.bf16.mxu1 %v2281_v28  ;;  %v2317_v28 = vld [vmem:[#allocation13 + $0x40] ss:$8 sps:$4 sm:$0xff]  }
 0x23b   :  { %587 = vmatpush1.bf16.msra.mxu0 %v2191_v27  ;;  %v2277_v27 = vld [vmem:[#allocation11 + $0x168] ss:$16 sps:$4 sm:$0xff]  }
 0x23c   :  { %588 = vmatprep.subr.bf16.mxu0 %v2196_v29  ;;  %v2285_v29 = vld [vmem:[#allocation11 + $0x18c] ss:$16 sps:$4 sm:$0xff]  }
 0x23f   :  { %589 = vmatpush1.bf16.msra.mxu0 %v2194_v30  ;;  %v2286_v30 = vld [vmem:[#allocation11 + $0x180] ss:$16 sps:$4 sm:$0xff]  }
 0x240   :  { %590 = vmatprep.subr.bf16.mxu0 %v2199_v31  ;;  %v2283_v31 = vld [vmem:[#allocation11 + $0x188] ss:$16 sps:$4 sm:$0xff]   ;;  %1088 = vmatpush1.bf16.msra.mxu1 %v2286_v30 }
 0x241   :  { %v2320_v30 = vld [vmem:[#allocation13 + $0x50] ss:$8 sps:$4 sm:$0xff]  }
 0x243   :  { %591 = vmatpush1.bf16.msra.mxu0 %v2197_v32  ;;  %v2287_v32 = vld [vmem:[#allocation11 + $0x1a4] ss:$16 sps:$4 sm:$0xff]  }
 0x244   :  { %592 = vmatprep.subr.bf16.mxu0 %v2202_v33  ;;  %v2291_v33 = vld [vmem:[#allocation11 + $0x1ac] ss:$16 sps:$4 sm:$0xff]   ;;  %1089 = vmatprep.subr.bf16.mxu1 %v2287_v32  ;;  %v2323_v32 = vld [vmem:[#allocation13 + $0x60] ss:$8 sps:$4 sm:$0xff]  }
 0x247   :  { %593 = vmatpush1.bf16.msra.mxu0 %v2200_v34  ;;  %v2292_v34 = vld [vmem:[#allocation11 + $0x1a0] ss:$16 sps:$4 sm:$0xff]  }
 0x248   :  { %594 = vmatprep.subr.bf16.mxu0 %v2205_v19  ;;  %v2289_v19 = vld [vmem:[#allocation11 + $0x1a8] ss:$16 sps:$4 sm:$0xff]   ;;  %1090 = vmatpush1.bf16.msra.mxu1 %v2292_v34 }
 0x249   :  { %1091 = vmatprep.subr.bf16.mxu1 %v2293_v35  ;;  %v2326_v34 = vld [vmem:[#allocation13 + $0x70] ss:$8 sps:$4 sm:$0xff]   ;;  %v2329_v35 = vld [vmem:[#allocation13 + $0x80] ss:$8 sps:$4 sm:$0xff]  }
 0x24b   :  { %595 = vmatpush1.bf16.msra.mxu0 %v2203_v36  ;;  %v2297_v36 = vld [vmem:[#allocation11 + $0x1cc] ss:$16 sps:$4 sm:$0xff]  }
 0x24c   :  { %596 = vmatprep.subr.bf16.mxu0 %v2208_v37  ;;  %v2298_v37 = vld [vmem:[#allocation11 + $0x1c0] ss:$16 sps:$4 sm:$0xff]  }
 0x24d   :  { %1092 = vmatpush1.bf16.msra.mxu1 %v2298_v37  ;;  %v2332_v37 = vld [vmem:[#allocation13 + $0x90] ss:$8 sps:$4 sm:$0xff]  }
 0x24e   :  { %1093 = vmatprep.subr.bf16.mxu1 %v2299_v39  ;;  %v2335_v39 = vld [vmem:[#allocation13 + $0xa0] ss:$8 sps:$4 sm:$0xff]  }
 0x24f   :  { %597 = vmatpush1.bf16.msra.mxu0 %v2206_v40  ;;  %v2303_v40 = vld [vmem:[#allocation11 + $0x1ec] ss:$16 sps:$4 sm:$0xff]  }
 0x250   :  { %1104 = vmatprep.subr.bf16.mxu0 %v2213_v44 }
 0x251   :  { %1094 = vmatpush1.bf16.msra.mxu1 %v2304_v41  ;;  %v2340_v41 = vld [vmem:[#allocation13 + $0xb4] ss:$8 sps:$4 sm:$0xff]  }
 0x252   :  { %615 = vmatmul.mubr.bf16.vlgmr.msra.gmra.mrb[8].mxu0 %v363_v42  ;;  %v2301_v42 = vld [vmem:[#allocation11 + $0x1e8] ss:$16 sps:$4 sm:$0xff]   ;;  %1581 = vmatprep.subr.bf16.mxu1 %v2307_v43 }
 0x253   :  { %1105 = vmatpush1.bf16.msra.mxu0 %v2211_v45  ;;  %v2341_v43 = vld [vmem:[#allocation13 + $0xc0] ss:$8 sps:$4 sm:$0xff]  }
 0x254   :  { %1106 = vmatprep.subr.bf16.mxu0 %v2219_v49 }
 0x257   :  { %1107 = vmatpush1.bf16.msra.mxu0 %v2217_v48  ;;  %v625_v48 = vlaneseq }
 0x258   :  { %1108 = vmatprep.subr.bf16.mxu0 %v2225_v52 }
 0x259   :  { %v2889_v49 = vshrl.u32 %v625_v48, 7  ;;  %v2352_v48 = vld [vmem:[#allocation13 + $0xf4] ss:$8 sps:$4 sm:$0xff]  }
 0x25b   :  { %1109 = vmatpush1.bf16.msra.mxu0 %v2223_v53  ;;  %v2892_v50 = vsub.s32 0, %v2889_v49  ;;  %v2898_v52 = vsub.s32 1, %v2889_v49 }
 0x25c   :  { %1110 = vmatprep.subr.bf16.mxu0 %v2231_v56 }
 0x25d   :  { %v628_v53 = vrot.slane %v623_v51, %v2892_v50  ;;  %v632_v55 = vrot.slane %v623_v51, %v2898_v52  ;;  %v2350_v51 = vld [vmem:[#allocation13 + $0xf0] ss:$8 sps:$4 sm:$0xff]  }
 0x25f   :  { %1111 = vmatpush1.bf16.msra.mxu0 %v2229_v57 }
 0x260   :  { %1112 = vmatprep.subr.bf16.mxu0 %v2237_v60 }
 0x263   :  { %1113 = vmatpush1.bf16.msra.mxu0 %v2235_v61 }
 0x264   :  { %1114 = vmatprep.subr.bf16.mxu0 %v2243_v0 }
 0x267   :  { %1115 = vmatpush1.bf16.msra.mxu0 %v2241_v1 }
 0x268   :  { %1116 = vmatprep.subr.bf16.mxu0 %v2249_v4 }
 0x26b   :  { %1117 = vmatpush1.bf16.msra.mxu0 %v2247_v5 }
 0x26c   :  { %1118 = vmatprep.subr.bf16.mxu0 %v2255_v8 }
 0x26f   :  { %1119 = vmatpush1.bf16.msra.mxu0 %v2253_v9 }
 0x270   :  { %1120 = vmatprep.subr.bf16.mxu0 %v2261_v13 }
 0x273   :  { %1121 = vmatpush1.bf16.msra.mxu0 %v2259_v12 }
 0x274   :  { %1122 = vmatprep.subr.bf16.mxu0 %v2267_v16 }
 0x277   :  { %1123 = vmatpush1.bf16.msra.mxu0 %v2265_v17 }
 0x278   :  { %1124 = vmatprep.subr.bf16.mxu0 %v2273_v21  ;;  %v2310_v21 = vld [vmem:[#allocation13 + $0x14] ss:$8 sps:$4 sm:$0xff]  }
 0x27b   :  { %1125 = vmatpush1.bf16.msra.mxu0 %v2271_v23  ;;  %v2313_v23 = vld [vmem:[#allocation13 + $0x24] ss:$8 sps:$4 sm:$0xff]  }
 0x27c   :  { %1126 = vmatprep.subr.bf16.mxu0 %v2279_v25  ;;  %v2316_v25 = vld [vmem:[#allocation13 + $0x34] ss:$8 sps:$4 sm:$0xff]  }
 0x27f   :  { %1127 = vmatpush1.bf16.msra.mxu0 %v2277_v27  ;;  %v2319_v27 = vld [vmem:[#allocation13 + $0x44] ss:$8 sps:$4 sm:$0xff]  }
 0x280   :  { %1128 = vmatprep.subr.bf16.mxu0 %v2285_v29  ;;  %v2322_v29 = vld [vmem:[#allocation13 + $0x54] ss:$8 sps:$4 sm:$0xff]  }
 0x283   :  { %1129 = vmatpush1.bf16.msra.mxu0 %v2283_v31  ;;  %v2325_v31 = vld [vmem:[#allocation13 + $0x64] ss:$8 sps:$4 sm:$0xff]  }
 0x284   :  { %1130 = vmatprep.subr.bf16.mxu0 %v2291_v33  ;;  %v2328_v33 = vld [vmem:[#allocation13 + $0x74] ss:$8 sps:$4 sm:$0xff]  }
 0x287   :  { %1131 = vmatpush1.bf16.msra.mxu0 %v2289_v19  ;;  %v2331_v19 = vld [vmem:[#allocation13 + $0x84] ss:$8 sps:$4 sm:$0xff]  }
 0x288   :  { %1132 = vmatprep.subr.bf16.mxu0 %v2297_v36  ;;  %v2334_v36 = vld [vmem:[#allocation13 + $0x94] ss:$8 sps:$4 sm:$0xff]  }
 0x28b   :  { %1133 = vmatpush1.bf16.msra.mxu0 %v2295_v38  ;;  %v2337_v38 = vld [vmem:[#allocation13 + $0xa4] ss:$8 sps:$4 sm:$0xff]  }
 0x28c   :  { %1134 = vmatprep.subr.bf16.mxu0 %v2303_v40  ;;  %v2338_v40 = vld [vmem:[#allocation13 + $0xb0] ss:$8 sps:$4 sm:$0xff]  }
 0x28f   :  { %1135 = vmatpush1.bf16.msra.mxu0 %v2301_v42  ;;  %v2343_v42 = vld [vmem:[#allocation13 + $0xc4] ss:$8 sps:$4 sm:$0xff]  }
 0x305   :  { %v495_v44 = vpop.f32.mrb[4].mxu0 }
 0x306   :  { %v497_v45 = vpop.f32.mrb[5].mxu0 }
 0x307   :  { %v499_v46 = vpop.f32.mrb[6].mxu0 }
 0x308   :  { %v500_v47 = vpop.f32.mrb[7].mxu0  ;;  %v2349_v46 = vld [vmem:[#allocation13 + $0xe4] ss:$8 sps:$4 sm:$0xff]  }
 0x309   :  { %v2347_v47 = vld [vmem:[#allocation13 + $0xe0] ss:$8 sps:$4 sm:$0xff]  }
 0x325   :  { %v616_v54 = vpop.f32.mrb[8].mxu0 }
 0x326   :  { %v617_v56 = vadd.f32 %v616_v54, %v495_v44  ;;  %v618_v57 = vpop.f32.mrb[9].mxu0  ;;  %v2346_v44 = vld [vmem:[#allocation13 + $0xd4] ss:$8 sps:$4 sm:$0xff]  }
 0x327   :  { %v619_v58 = vadd.f32 %v618_v57, %v497_v45  ;;  %v620_v59 = vpop.f32.mrb[10].mxu0  ;;  %v2344_v45 = vld [vmem:[#allocation13 + $0xd0] ss:$8 sps:$4 sm:$0xff]  }
 0x328   :  { %v635_v60 = vadd.f32 %v628_v53, %v617_v56  ;;  %v621_v61 = vpop.f32.mrb[11].mxu0  ;;  %v2355_v53 = vld [vmem:[#allocation13 + $0x104] ss:$8 sps:$4 sm:$0xff]   ;;  %v2905_v54 = vld [vmem:[%s2949_s11] sm:$0xf] }
 0x329   :  { %v636_v62 = vadd.f32 %v632_v55, %v619_v58  ;;  %v737_v55 = vsub.s32 3, %v2889_v49  ;;  %v726_v56 = vrot.slane %v2905_v54, %v2892_v50  ;;  %v730_v57 = vrot.slane %v2905_v54, %v2898_v52 }
 0x32a   :  { %v639_v63 = vmul.f32 0.044715, %v635_v60  ;;  %v637_v11 = vmul.f32 0.5, %v635_v60 }
 0x32b   :  { %v640_v0 = vmul.f32 0.044715, %v636_v62  ;;  %v638_v13 = vmul.f32 0.5, %v636_v62  ;;  %v738_v58 = vrot.slane %v2905_v54, %v737_v55 }
 0x32c   :  { %v641_v1 = vmul.f32 %v639_v63, %v635_v60 }
 0x32d   :  { %v642_v2 = vmul.f32 %v640_v0, %v636_v62 }
 0x32e   :  { %v643_v3 = vmul.f32 %v641_v1, %v635_v60 }
 0x32f   :  { %v644_v4 = vmul.f32 %v642_v2, %v636_v62 }
 0x330   :  { %v645_v5 = vadd.f32 %v643_v3, %v635_v60 }
 0x331   :  { %v646_v6 = vadd.f32 %v644_v4, %v636_v62 }
 0x332   :  { %v647_v7 = vmul.f32 0.7978846, %v645_v5 }
 0x333   :  { %v648_v8 = vmul.f32 0.7978846, %v646_v6 }
 0x334   :  { %2423 = vtanh.f32 %v647_v7 }
 0x335   :  { %2425 = vtanh.f32 %v648_v8 }
 0x33e   :  { %v2424_v9 = vpop.eup %2423 }
 0x33f   :  { %v2426_v10 = vpop.eup %2425  ;;  %v651_v12 = vadd.f32 1.0, %v2424_v9 }
 0x340   :  { %v652_v14 = vadd.f32 1.0, %v2426_v10 }
 0x341   :  { %v653_v15 = vmul.f32 %v651_v12, %v637_v11 }
 0x342   :  { %v654_v16 = vmul.f32 %v652_v14, %v638_v13 }
 0x343   :  { %v719_v20 = vpack.c.bf16 %v653_v15, %v653_v15 }
 0x344   :  { %v720_v17 = vpack.c.bf16 %v654_v16, %v654_v16 }
 0x346   :  { %1095 = vmatprep.mubr.bf16.mxu1 %v720_v17  ;;  %1136 = vmatprep.mubr.bf16.mxu0 %v720_v17 }
 0x347   :  { %1096 = vmatmul.mubr.bf16.vlgmr.msra.gmra.mrb[0].mxu1 %v719_v20  ;;  %1137 = vmatmul.mubr.bf16.vlgmr.msra.gmra.mrb[12].mxu0 %v719_v20 }
 0x348   :  { %1582 = vmatpush1.bf16.msra.mxu1 %v2305_v18 }
 0x349   :  { %1583 = vmatprep.subr.bf16.mxu1 %v2310_v21 }
 0x34c   :  { %1584 = vmatpush1.bf16.msra.mxu1 %v2308_v22 }
 0x34d   :  { %1585 = vmatprep.subr.bf16.mxu1 %v2313_v23 }
 0x350   :  { %1586 = vmatpush1.bf16.msra.mxu1 %v2311_v24 }
 0x351   :  { %1587 = vmatprep.subr.bf16.mxu1 %v2316_v25 }
 0x354   :  { %1588 = vmatpush1.bf16.msra.mxu1 %v2314_v26 }
 0x355   :  { %1589 = vmatprep.subr.bf16.mxu1 %v2319_v27 }
 0x358   :  { %1590 = vmatpush1.bf16.msra.mxu1 %v2317_v28 }
 0x359   :  { %1591 = vmatprep.subr.bf16.mxu1 %v2322_v29 }
 0x35c   :  { %1592 = vmatpush1.bf16.msra.mxu1 %v2320_v30 }
 0x35d   :  { %1593 = vmatprep.subr.bf16.mxu1 %v2325_v31 }
 0x360   :  { %1594 = vmatpush1.bf16.msra.mxu1 %v2323_v32 }
 0x361   :  { %1595 = vmatprep.subr.bf16.mxu1 %v2328_v33 }
 0x364   :  { %1596 = vmatpush1.bf16.msra.mxu1 %v2326_v34 }
 0x365   :  { %1597 = vmatprep.subr.bf16.mxu1 %v2331_v19  ;;  %v2353_v19 = vld [vmem:[#allocation13 + $0x100] ss:$8 sps:$4 sm:$0xff]  }
 0x368   :  { %1598 = vmatpush1.bf16.msra.mxu1 %v2329_v35 }
 0x369   :  { %1599 = vmatprep.subr.bf16.mxu1 %v2334_v36  ;;  %v2358_v36 = vld [vmem:[#allocation13 + $0x114] ss:$8 sps:$4 sm:$0xff]  }
 0x36c   :  { %1600 = vmatpush1.bf16.msra.mxu1 %v2332_v37 }
 0x36d   :  { %1601 = vmatprep.subr.bf16.mxu1 %v2337_v38  ;;  %v2356_v38 = vld [vmem:[#allocation13 + $0x110] ss:$8 sps:$4 sm:$0xff]  }
 0x370   :  { %1602 = vmatpush1.bf16.msra.mxu1 %v2335_v39  ;;  %v2361_v39 = vld [vmem:[#allocation13 + $0x124] ss:$8 sps:$4 sm:$0xff]  }
 0x371   :  { %1603 = vmatprep.subr.bf16.mxu1 %v2340_v41  ;;  %v2364_v41 = vld [vmem:[#allocation13 + $0x134] ss:$8 sps:$4 sm:$0xff]  }
 0x374   :  { %1604 = vmatpush1.bf16.msra.mxu1 %v2338_v40  ;;  %v2359_v40 = vld [vmem:[#allocation13 + $0x120] ss:$8 sps:$4 sm:$0xff]  }
 0x375   :  { %1605 = vmatprep.subr.bf16.mxu1 %v2343_v42  ;;  %v733_v42 = vsub.s32 2, %v2889_v49  ;;  %v2376_v49 = vld [vmem:[#allocation13 + $0x174] ss:$8 sps:$4 sm:$0xff]  }
 0x378   :  { %1606 = vmatpush1.bf16.msra.mxu1 %v2341_v43  ;;  %v2362_v43 = vld [vmem:[#allocation13 + $0x130] ss:$8 sps:$4 sm:$0xff]  }
 0x379   :  { %1607 = vmatprep.subr.bf16.mxu1 %v2346_v44  ;;  %v2367_v44 = vld [vmem:[#allocation13 + $0x144] ss:$8 sps:$4 sm:$0xff]  }
 0x37c   :  { %1608 = vmatpush1.bf16.msra.mxu1 %v2344_v45  ;;  %v734_v45 = vrot.slane %v2905_v54, %v733_v42  ;;  %v2379_v54 = vld [vmem:[#allocation13 + $0x184] ss:$8 sps:$4 sm:$0xff]  }
 0x37d   :  { %1609 = vmatprep.subr.bf16.mxu1 %v2349_v46  ;;  %v2365_v46 = vld [vmem:[#allocation13 + $0x140] ss:$8 sps:$4 sm:$0xff]  }
 0x380   :  { %1610 = vmatpush1.bf16.msra.mxu1 %v2347_v47  ;;  %v2370_v47 = vld [vmem:[#allocation13 + $0x154] ss:$8 sps:$4 sm:$0xff]  }
 0x381   :  { %1611 = vmatprep.subr.bf16.mxu1 %v2352_v48 }
 0x384   :  { %1612 = vmatpush1.bf16.msra.mxu1 %v2350_v51  ;;  %v2368_v51 = vld [vmem:[#allocation13 + $0x150] ss:$8 sps:$4 sm:$0xff]  }
 0x385   :  { %1622 = vmatprep.subr.bf16.mxu1 %v2355_v53  ;;  %v2373_v53 = vld [vmem:[#allocation13 + $0x164] ss:$8 sps:$4 sm:$0xff]  }
 0x41a   :  { %v1097_v59 = vpop.f32.mrb[0].mxu1  ;;  %v2913_v60 = vpop.f32.mrb[12].mxu0 }
 0x41b   :  { %v1098_v61 = vadd.f32 %v1097_v59, %v726_v56  ;;  %v1099_v62 = vpop.f32.mrb[1].mxu1  ;;  %v1140_v63 = vpop.f32.mrb[13].mxu0  ;;  %v1139_v48 = vadd.f32 %v2913_v60, %v734_v45  ;;  %v2371_v56 = vld [vmem:[#allocation13 + $0x160] ss:$8 sps:$4 sm:$0xff]  }
 0x41c   :  { %v1100_v0 = vadd.f32 %v1099_v62, %v730_v57  ;;  %v1141_v1 = vadd.f32 %v1140_v63, %v738_v58  ;;  %v1101_v2 = vpop.f32.mrb[2].mxu1  ;;  %v1142_v3 = vpop.f32.mrb[14].mxu0  ;;  %v2374_v58 = vld [vmem:[#allocation13 + $0x170] ss:$8 sps:$4 sm:$0xff]   ;;  %v2382_v62 = vld [vmem:[#allocation13 + $0x194] ss:$8 sps:$4 sm:$0xff]  }
 0x41d   :  { %v1149_v4 = vmul.f32 0.044715, %v1098_v61  ;;  %v1102_v5 = vpop.f32.mrb[3].mxu1  ;;  %v1143_v6 = vpop.f32.mrb[15].mxu0  ;;  %v1145_v24 = vmul.f32 0.5, %v1098_v61 }
 0x41e   :  { %v1150_v7 = vmul.f32 0.044715, %v1100_v0  ;;  %v1152_v8 = vmul.f32 0.044715, %v1141_v1  ;;  %v1146_v27 = vmul.f32 0.5, %v1100_v0  ;;  %v1148_v30 = vmul.f32 0.5, %v1141_v1 }
 0x41f   :  { %v1153_v9 = vmul.f32 %v1149_v4, %v1098_v61  ;;  %v1151_v55 = vmul.f32 0.044715, %v1139_v48  ;;  %v2380_v63 = vld [vmem:[#allocation13 + $0x190] ss:$8 sps:$4 sm:$0xff]   ;;  %v2388_v3 = vld [vmem:[#allocation13 + $0x1b4] ss:$8 sps:$4 sm:$0xff]  }
 0x420   :  { %v1154_v10 = vmul.f32 %v1150_v7, %v1100_v0  ;;  %v1156_v11 = vmul.f32 %v1152_v8, %v1141_v1  ;;  %v2386_v4 = vld [vmem:[#allocation13 + $0x1b0] ss:$8 sps:$4 sm:$0xff]   ;;  %v2391_v5 = vld [vmem:[#allocation13 + $0x1c4] ss:$8 sps:$4 sm:$0xff]   ;;  %v2389_v6 = vld [vmem:[#allocation13 + $0x1c0] ss:$8 sps:$4 sm:$0xff]  }
 0x421   :  { %v1157_v12 = vmul.f32 %v1153_v9, %v1098_v61  ;;  %v1155_v57 = vmul.f32 %v1151_v55, %v1139_v48  ;;  %v2394_v7 = vld [vmem:[#allocation13 + $0x1d4] ss:$8 sps:$4 sm:$0xff]   ;;  %v2392_v8 = vld [vmem:[#allocation13 + $0x1d0] ss:$8 sps:$4 sm:$0xff]   ;;  %v2397_v9 = vld [vmem:[#allocation13 + $0x1e4] ss:$8 sps:$4 sm:$0xff]  }
 0x422   :  { %v1158_v13 = vmul.f32 %v1154_v10, %v1100_v0  ;;  %v1160_v14 = vmul.f32 %v1156_v11, %v1141_v1  ;;  %v2395_v11 = vld [vmem:[#allocation13 + $0x1e0] ss:$8 sps:$4 sm:$0xff]  }
 0x423   :  { %v1161_v15 = vadd.f32 %v1157_v12, %v1098_v61  ;;  %v1159_v59 = vmul.f32 %v1155_v57, %v1139_v48  ;;  %v2377_v61 = vld [vmem:[#allocation13 + $0x180] ss:$8 sps:$4 sm:$0xff]   ;;  %v2400_v12 = vld [vmem:[#allocation13 + $0x1f4] ss:$8 sps:$4 sm:$0xff]  }
 0x424   :  { %v1162_v16 = vadd.f32 %v1158_v13, %v1100_v0  ;;  %v1164_v17 = vadd.f32 %v1160_v14, %v1141_v1  ;;  %v2385_v0 = vld [vmem:[#allocation13 + $0x1a4] ss:$8 sps:$4 sm:$0xff]   ;;  %v2383_v1 = vld [vmem:[#allocation13 + $0x1a0] ss:$8 sps:$4 sm:$0xff]   ;;  %v1147_v14 = vmul.f32 0.5, %v1139_v48 }
 0x425   :  { %v1165_v18 = vmul.f32 0.7978846, %v1161_v15  ;;  %v1163_v60 = vadd.f32 %v1159_v59, %v1139_v48  ;;  %v2398_v15 = vld [vmem:[#allocation13 + $0x1f0] ss:$8 sps:$4 sm:$0xff]  }
 0x426   :  { %v1166_v20 = vmul.f32 0.7978846, %v1162_v16  ;;  %v1168_v21 = vmul.f32 0.7978846, %v1164_v17 }
 0x427   :  { %2427 = vtanh.f32 %v1165_v18  ;;  %v1167_v2 = vmul.f32 0.7978846, %v1163_v60  ;;  %v2401_v18 = vld [vmem:[#allocation14 + $0x40] sm:$0xff]  }
 0x428   :  { %2429 = vtanh.f32 %v1166_v20  ;;  %v2402_v20 = vld [vmem:[#allocation14] sm:$0xff]   ;;  %2073 = vmatprep.subr.bf16.mxu0 %v2401_v18 }
 0x429   :  { %2431 = vtanh.f32 %v1168_v21  ;;  %2074 = vmatpush3.bf16.msra.mxu0 %v2402_v20  ;;  %v2403_v21 = vld [vmem:[#allocation14 + $0x48] sm:$0xff]  }
 0x42a   :  { %2433 = vtanh.f32 %v1167_v2  ;;  %2075 = vmatprep.subr.bf16.mxu0 %v2403_v21 }
 0x431   :  { %v2428_v22 = vpop.eup %2427 }
 0x432   :  { %v2430_v23 = vpop.eup %2429  ;;  %v1173_v25 = vadd.f32 1.0, %v2428_v22  ;;  %v2404_v22 = vld [vmem:[#allocation14 + $0x8] sm:$0xff]  }
 0x433   :  { %v2432_v26 = vpop.eup %2431  ;;  %v1174_v28 = vadd.f32 1.0, %v2430_v23  ;;  %2076 = vmatpush3.bf16.msra.mxu0 %v2404_v22  ;;  %v2405_v23 = vld [vmem:[#allocation14 + $0x50] sm:$0xff]  }
 0x434   :  { %v1177_v29 = vmul.f32 %v1173_v25, %v1145_v24  ;;  %v1176_v31 = vadd.f32 1.0, %v2432_v26  ;;  %v2434_v10 = vpop.eup %2433  ;;  %v2406_v24 = vld [vmem:[#allocation14 + $0x10] sm:$0xff]   ;;  %v2407_v25 = vld [vmem:[#allocation14 + $0x58] sm:$0xff]   ;;  %2077 = vmatprep.subr.bf16.mxu0 %v2405_v23 }
 0x435   :  { %v1178_v32 = vmul.f32 %v1174_v28, %v1146_v27  ;;  %v1175_v13 = vadd.f32 1.0, %v2434_v10  ;;  %v2408_v26 = vld [vmem:[#allocation14 + $0x18] sm:$0xff]   ;;  %v2409_v27 = vld [vmem:[#allocation14 + $0x60] sm:$0xff]  }
 0x436   :  { %v1180_v33 = vmul.f32 %v1176_v31, %v1148_v30  ;;  %v1245_v35 = vpack.c.bf16 %v1177_v29, %v1177_v29  ;;  %v2410_v28 = vld [vmem:[#allocation14 + $0x20] sm:$0xff]   ;;  %v2411_v29 = vld [vmem:[#allocation14 + $0x68] sm:$0xff]   ;;  %v2413_v31 = vld [vmem:[#allocation14 + $0x70] sm:$0xff]  }
 0x437   :  { %v1246_v34 = vpack.c.bf16 %v1178_v32, %v1178_v32  ;;  %v1179_v16 = vmul.f32 %v1175_v13, %v1147_v14  ;;  %2078 = vmatpush3.bf16.msra.mxu0 %v2406_v24  ;;  %v2412_v30 = vld [vmem:[#allocation14 + $0x28] sm:$0xff]   ;;  %v2414_v32 = vld [vmem:[#allocation14 + $0x30] sm:$0xff]  }
 0x438   :  { %v1248_v37 = vpack.c.bf16 %v1180_v33, %v1180_v33  ;;  %2079 = vmatprep.subr.bf16.mxu0 %v2407_v25  ;;  %v2415_v33 = vld [vmem:[#allocation14 + $0x78] sm:$0xff]  }
 0x439   :  { %1613 = vmatprep.mubr.bf16.mxu1 %v1246_v34  ;;  %v1247_v17 = vpack.c.bf16 %v1179_v16, %v1179_v16  ;;  %v2416_v34 = vld [vmem:[#allocation14 + $0x38] sm:$0xff]  }
 0x43a   :  { %1614 = vmatmul.mubr.bf16.vlgmr.msra.gmra.mrb[4].mxu1 %v1245_v35 }
 0x43b   :  { %1623 = vmatpush1.bf16.msra.mxu1 %v2353_v19  ;;  %1654 = vmatprep.mubr.bf16.mxu1 %v1248_v37  ;;  %v1249_v19 = vld [vmem:[%s2951_s13] sm:$0x3] }
 0x43c   :  { %1624 = vmatprep.subr.bf16.mxu1 %v2358_v36  ;;  %2080 = vmatpush3.bf16.msra.mxu0 %v2408_v26  ;;  %v1254_v35 = vrot.slane %v1249_v19, %v2892_v50  ;;  %v1258_v36 = vrot.slane %v1249_v19, %v2898_v52 }
 0x43d   :  { %2081 = vmatprep.subr.bf16.mxu0 %v2409_v27 }
 0x43f   :  { %1625 = vmatpush1.bf16.msra.mxu1 %v2356_v38 }
 0x440   :  { %1626 = vmatprep.subr.bf16.mxu1 %v2361_v39  ;;  %2082 = vmatpush3.bf16.msra.mxu0 %v2410_v28 }
 0x441   :  { %2083 = vmatprep.subr.bf16.mxu0 %v2411_v29 }
 0x443   :  { %1627 = vmatpush1.bf16.msra.mxu1 %v2359_v40 }
 0x444   :  { %1628 = vmatprep.subr.bf16.mxu1 %v2364_v41  ;;  %2084 = vmatpush3.bf16.msra.mxu0 %v2412_v30 }
 0x445   :  { %2085 = vmatprep.subr.bf16.mxu0 %v2413_v31 }
 0x447   :  { %1629 = vmatpush1.bf16.msra.mxu1 %v2362_v43 }
 0x448   :  { %1630 = vmatprep.subr.bf16.mxu1 %v2367_v44  ;;  %2086 = vmatpush3.bf16.msra.mxu0 %v2414_v32 }
 0x449   :  { %2087 = vmatprep.subr.bf16.mxu0 %v2415_v33 }
 0x44b   :  { %1631 = vmatpush1.bf16.msra.mxu1 %v2365_v46 }
 0x44c   :  { %1632 = vmatprep.subr.bf16.mxu1 %v2370_v47  ;;  %2088 = vmatpush3.bf16.msra.mxu0 %v2416_v34 }
 0x44f   :  { %1633 = vmatpush1.bf16.msra.mxu1 %v2368_v51 }
 0x450   :  { %1634 = vmatprep.subr.bf16.mxu1 %v2373_v53 }
 0x453   :  { %1635 = vmatpush1.bf16.msra.mxu1 %v2371_v56 }
 0x454   :  { %1636 = vmatprep.subr.bf16.mxu1 %v2376_v49 }
 0x457   :  { %1637 = vmatpush1.bf16.msra.mxu1 %v2374_v58 }
 0x458   :  { %1638 = vmatprep.subr.bf16.mxu1 %v2379_v54 }
 0x45b   :  { %1639 = vmatpush1.bf16.msra.mxu1 %v2377_v61 }
 0x45c   :  { %1640 = vmatprep.subr.bf16.mxu1 %v2382_v62 }
 0x45f   :  { %1641 = vmatpush1.bf16.msra.mxu1 %v2380_v63 }
 0x460   :  { %1642 = vmatprep.subr.bf16.mxu1 %v2385_v0  ;;  %v2047_v0 = vld [vmem:[%s2953_s15] ss:$0 sm:$0xff] }
 0x463   :  { %1643 = vmatpush1.bf16.msra.mxu1 %v2383_v1 }
 0x464   :  { %1644 = vmatprep.subr.bf16.mxu1 %v2388_v3 }
 0x467   :  { %1645 = vmatpush1.bf16.msra.mxu1 %v2386_v4 }
 0x468   :  { %1646 = vmatprep.subr.bf16.mxu1 %v2391_v5 }
 0x46b   :  { %1647 = vmatpush1.bf16.msra.mxu1 %v2389_v6 }
 0x46c   :  { %1648 = vmatprep.subr.bf16.mxu1 %v2394_v7 }
 0x46f   :  { %1649 = vmatpush1.bf16.msra.mxu1 %v2392_v8 }
 0x470   :  { %1650 = vmatprep.subr.bf16.mxu1 %v2397_v9 }
 0x473   :  { %1651 = vmatpush1.bf16.msra.mxu1 %v2395_v11 }
 0x474   :  { %1652 = vmatprep.subr.bf16.mxu1 %v2400_v12 }
 0x477   :  { %1653 = vmatpush1.bf16.msra.mxu1 %v2398_v15 }
 0x47a   :  { %1655 = vmatmul.mubr.bf16.vlgmr.msra.gmra.mrb[4].mxu1 %v1247_v17 }
 0x54d   :  { %v1656_v37 = vpop.f32.mrb[4].mxu1 }
 0x54e   :  { %v2126_v38 = vadd.f32 %v1656_v37, %v1254_v35  ;;  %v1658_v39 = vpop.f32.mrb[5].mxu1 }
 0x54f   :  { %v2127_v40 = vadd.f32 %v1658_v39, %v1258_v36  ;;  %v1660_v41 = vpop.f32.mrb[6].mxu1 }
 0x550   :  { %v1665_v42 = vmul.f32 0.044715, %v2126_v38  ;;  %v1661_v43 = vpop.f32.mrb[7].mxu1  ;;  %v1663_v49 = vmul.f32 0.5, %v2126_v38 }
 0x551   :  { %v1666_v44 = vmul.f32 0.044715, %v2127_v40  ;;  %v1664_v58 = vmul.f32 0.5, %v2127_v40 }
 0x552   :  { %v1667_v45 = vmul.f32 %v2126_v38, %v1665_v42 }
 0x553   :  { %v1668_v46 = vmul.f32 %v2127_v40, %v1666_v44 }
 0x554   :  { %v1669_v47 = vmul.f32 %v2126_v38, %v1667_v45 }
 0x555   :  { %v1670_v48 = vmul.f32 %v2127_v40, %v1668_v46 }
 0x556   :  { %v1671_v51 = vadd.f32 %v2126_v38, %v1669_v47 }
 0x557   :  { %v1672_v53 = vadd.f32 %v2127_v40, %v1670_v48 }
 0x558   :  { %v1673_v55 = vmul.f32 0.7978846, %v1671_v51 }
 0x559   :  { %v1674_v56 = vmul.f32 0.7978846, %v1672_v53 }
 0x55a   :  { %2435 = vtanh.f32 %v1673_v55 }
 0x55b   :  { %2437 = vtanh.f32 %v1674_v56 }
 0x564   :  { %v2436_v50 = vpop.eup %2435 }
 0x565   :  { %v2438_v52 = vpop.eup %2437  ;;  %v1677_v57 = vadd.f32 1.0, %v2436_v50 }
 0x566   :  { %v1678_v54 = vadd.f32 1.0, %v2438_v52 }
 0x567   :  { %v1679_v59 = vmul.f32 %v1677_v57, %v1663_v49 }
 0x568   :  { %v1680_v61 = vmul.f32 %v1678_v54, %v1664_v58 }
 0x569   :  { %v1713_v60 = vpack.c.bf16 %v1679_v59, %v1679_v59 }
 0x56a   :  { %v1714_v62 = vpack.c.bf16 %v1680_v61, %v1680_v61 }
 0x56c   :  { %1850 = vmatprep.mubr.bf16.mxu0 %v1714_v62 }
 0x56d   :  { %1851 = vmatmul.mubr.bf16.vlgmr.msra.gmra.mrb[16].mxu0 %v1713_v60 }
 0x640   :  { %v2089_v63 = vpop.f32.mrb[16].mxu0 }
 0x641   :  { %v2090_v1 = vpop.f32.mrb[17].mxu0 }
 0x642   :  { %v2091_v2 = vadd.f32 %v2090_v1, %v2089_v63  ;;  %v2092_v3 = vpop.f32.mrb[18].mxu0 }
 0x643   :  { %v2093_v4 = vpop.f32.mrb[19].mxu0 }
 0x644   :  { %v1853_v5 = vadd.f32 %v2091_v2, %v2047_v0 }
 0x646   :  { %1858 = vst [vmem:[#allocation16] sm:$0xf] %v1853_v5 }
 0x647   :  { %2626 = shalt.err (!%p2623_p12)
}
 0x648   :  { %s2627_s15 = scalar_lea.hbm %s2954_s16, 64 }
 0x649   :  { %p2628_p13 = scmp.ne.s32.totalorder %s2954_s16, %s2627_s15  ;;  %p2631_p0 = scmp.lt.u32.totalorder %s2627_s15, %s2954_s16 }
 0x64b   :  { %p2633_p1 = pnand %p2631_p0, %p2628_p13 }
 0x64d   :  { %2636 = shalt.err (!%p2633_p1)
}
 0x64e   :  { %1868 = dma.vmem_to_hbm [thread:$0]  %s1866_s26, 64, %s2954_s16, [#allocation4]  }
 0x64f   :  { %2647 = dma.done.wait [#allocation4], 64  }
 0x650   :  { %2648 = vsyncadd [#allocation4], 4294967232 }
 0x651   :  { %1872 = vsyncpa [#allocation3], 1 }
 0x652   :  { %1873 = vsyncpa [#allocation6], 1 }
 0x653   :  { %1874 = vsyncpa [#allocation9], 1 }
 0x654   :  { %1875 = vsyncpa [#allocation12], 1 }
 0x655   :  { %1876 = vsyncpa [#allocation15], 1 }
 0x656   :  { %1877 = vsyncpa [#allocation4], 1 }

</bundles_post_ra>
